<compile_context>
chip_gen: v7x
topology: tpu7x:2x2x1
jax: 0.10.0
libtpu: 0.0.40
codegen_flags: <defaults>
</compile_context>

<pallas_src>
import functools

import jax
import jax.numpy as jnp
from jax import lax
from jax.experimental import pallas as pl
from jax.experimental.pallas import tpu as pltpu


# ---------------------------------------------------------------------------
# Fused kernel: batched MLP + view + (repeat/upsample/pad/conv) for one tile.
# ---------------------------------------------------------------------------
def secret_encoder_kernel(sec_ref, w1_ref, b1_ref, w2_ref, b2_ref,
                          rep_ref, msk_ref, cec_ref, erbd_ref, bias_ref,
                          o_ref, *, bt, cw_lanes):
    i = pl.program_id(0)
    row0 = pl.multiple_of(i * bt, bt)
    x = sec_ref[pl.ds(row0, bt), :]                               # (bt, S) f32

    # ---- batched 2-layer MLP with SiLU (MXU bf16/f32 + EUP, f32 accumulate)
    wdt = w1_ref.dtype
    h = jnp.dot(x.astype(wdt), w1_ref[...],
                preferred_element_type=jnp.float32) + b1_ref[...]
    h = h * jax.nn.sigmoid(h)
    h = jnp.dot(h.astype(wdt), w2_ref[...],
                preferred_element_type=jnp.float32) + b2_ref[...]
    h = h * jax.nn.sigmoid(h)                                     # (bt, Br*Br) f32

    # ---- View(-1, 1, Br, Br): replicate each batch row Br times (0/1 matmul)
    # and keep only lane-window i in replica i (0/1 mask).  This moves the map
    # row index onto sublanes without any reshape / per-row store loop.
    hm = jnp.dot(rep_ref[...], h,
                 preferred_element_type=jnp.float32) * msk_ref[...]  # (bt*Br, hid)

    # ---- Repeat(4) + nearest Upsample + pad + 3x3 conv, column/tap stage.
    # CEc already contains the per-(kh,kw,co) conv weights folded in; one wide
    # lane-dense matmul covers every vertical tap and output channel at once.
    t = jnp.dot(hm, cec_ref[...],
                preferred_element_type=jnp.float32)               # (bt*Br, 3*CW)

    # ---- Row-expansion stage: block-diagonal Er per vertical tap; bias folded
    # as a single lane-dense add on the final accumulator.
    acc = bias_ref[...] + jnp.dot(erbd_ref[0], t[:, 0 * cw_lanes:1 * cw_lanes],
                                  preferred_element_type=jnp.float32)
    acc = acc + jnp.dot(erbd_ref[1], t[:, 1 * cw_lanes:2 * cw_lanes],
                        preferred_element_type=jnp.float32)
    acc = acc + jnp.dot(erbd_ref[2], t[:, 2 * cw_lanes:3 * cw_lanes],
                        preferred_element_type=jnp.float32)
    o_ref[...] = acc                                              # (bt*R, cout*R)


# ---------------------------------------------------------------------------
# Host-side constant construction
# ---------------------------------------------------------------------------
def _expansion_matrices(base_res, resolution):
    """0/1 matrices folding nearest-upsample + zero pad + tap shift into matmuls.

    er[k] (R, base_res): row expansion for vertical tap k (dy = k-1).
    ec[k] (base_res, R): column expansion for horizontal tap k (dx = k-1).
    shifted(kh,kw) = er[kh] @ m @ ec[kw], with zero rows/cols at the border.
    """
    f = resolution // base_res
    pos = jnp.arange(resolution)
    mats = []
    for k in range(3):
        src = pos + (k - 1)
        valid = (src >= 0) & (src < resolution)
        idx = jnp.clip(src, 0, resolution - 1) // f
        onehot = idx[:, None] == jnp.arange(base_res)[None, :]
        mats.append((valid[:, None] & onehot).astype(jnp.float32))
    er = jnp.stack(mats)                         # (3, R, base_res)
    ec = jnp.stack([m.T for m in mats])          # (3, base_res, R)
    return er, ec


def _pick_batch_tile(batch, max_tile=8):
    """Batch rows per grid step; keep >= 2 grid steps when possible (v7x)."""
    if batch <= 1:
        return 1
    best = 1
    for bt in range(1, min(batch, max_tile) + 1):
        if batch % bt == 0 and batch // bt >= 2:
            best = bt
    return best


# ---------------------------------------------------------------------------
# Wrapper
# ---------------------------------------------------------------------------
def secret_encoder_forward(sec, params, *, base_res, resolution,
                           mlp_dtype=jnp.bfloat16, batch_tile=None):
    w1, b1, w2, b2, cw, cb = params
    sec = sec.astype(jnp.float32)
    B, S = sec.shape
    hidden = base_res * base_res
    cout = cw.shape[0]
    R = resolution
    CW = cout * R
    assert resolution % base_res == 0
    assert w1.shape == (S, hidden) and w2.shape == (hidden, hidden)

    bt = batch_tile if batch_tile is not None else _pick_batch_tile(B)
    assert B % bt == 0
    grid = B // bt
    rows = bt * base_res

    er, ec = _expansion_matrices(base_res, resolution)
    # All conv input channels see the identical secret map (Repeat(4,1,1)), so
    # summing the weights over ci is an exact algebraic identity.
    w_eff = jnp.sum(cw, axis=1).astype(jnp.float32)                # (cout, 3, 3)

    # Fold per-tap conv weights into one wide, lane-dense column-expansion
    # matrix:  ec_all[j, kh*CW + co*R + x] = sum_kw w_eff[co,kh,kw]*ec[kw][j,x]
    ec_eff = jnp.einsum("ohw,wjx->hjox", w_eff, ec)                # (3,Br,cout,R)
    ec_all = jnp.transpose(ec_eff.reshape(3, base_res, CW),
                           (1, 0, 2)).reshape(base_res, 3 * CW)    # (Br, 3*CW)
    cec = jnp.tile(ec_all, (base_res, 1))                          # (hidden, 3*CW)

    # Row replication matrix + window-selection mask (the in-kernel "View").
    rep_mat = (jnp.arange(rows)[:, None] // base_res
               == jnp.arange(bt)[None, :]).astype(jnp.float32)     # (rows, bt)
    win_mask = (jnp.arange(hidden)[None, :] // base_res
                == (jnp.arange(rows) % base_res)[:, None]).astype(jnp.float32)

    # Block-diagonal row-expansion matrices (vertical upsample + tap + pad).
    eye_bt = jnp.eye(bt, dtype=jnp.float32)
    er_bd = jnp.stack([jnp.kron(eye_bt, er[k]) for k in range(3)])  # (3,bt*R,rows)

    bias_row = jnp.repeat(cb.astype(jnp.float32), R)[None, :]       # (1, CW)

    w1c = w1.astype(mlp_dtype)
    w2c = w2.astype(mlp_dtype)
    b1r = b1.reshape(1, hidden).astype(jnp.float32)
    b2r = b2.reshape(1, hidden).astype(jnp.float32)

    flops = int(B * (2 * S * hidden + 2 * hidden * hidden)
                + grid * 2 * rows * bt * hidden
                + grid * 2 * rows * hidden * 3 * CW
                + grid * 3 * 2 * (bt * R) * rows * CW)
    bytes_accessed = int(sec.nbytes + w1c.nbytes + b1r.nbytes + w2c.nbytes
                         + b2r.nbytes + rep_mat.nbytes + win_mask.nbytes
                         + cec.nbytes + er_bd.nbytes + bias_row.nbytes
                         + B * R * CW * 4)
    cost = pl.CostEstimate(flops=flops, transcendentals=int(2 * B * hidden),
                           bytes_accessed=bytes_accessed)

    kernel = functools.partial(secret_encoder_kernel, bt=bt, cw_lanes=CW)
    out2d = pl.pallas_call(
        kernel,
        out_shape=jax.ShapeDtypeStruct((B * R, CW), jnp.float32),
        grid=(grid,),
        in_specs=[
            pl.BlockSpec((B, S), lambda i: (0, 0)),                # sec (resident)
            pl.BlockSpec((S, hidden), lambda i: (0, 0)),           # w1
            pl.BlockSpec((1, hidden), lambda i: (0, 0)),           # b1
            pl.BlockSpec((hidden, hidden), lambda i: (0, 0)),      # w2
            pl.BlockSpec((1, hidden), lambda i: (0, 0)),           # b2
            pl.BlockSpec((rows, bt), lambda i: (0, 0)),            # replication
            pl.BlockSpec((rows, hidden), lambda i: (0, 0)),        # window mask
            pl.BlockSpec((hidden, 3 * CW), lambda i: (0, 0)),      # CEc (folded)
            pl.BlockSpec((3, bt * R, rows), lambda i: (0, 0, 0)),  # Er block-diag
            pl.BlockSpec((1, CW), lambda i: (0, 0)),               # conv bias row
        ],
        out_specs=pl.BlockSpec((bt * R, CW), lambda i: (i, 0)),    # lane-dense slab
        compiler_params=pltpu.CompilerParams(
            dimension_semantics=("parallel",)),
        cost_estimate=cost,
    )(sec, w1c, b1r, w2c, b2r, rep_mat, win_mask, cec, er_bd, bias_row)

    # Lane-dense (B*R, cout*R) slab -> (B, cout, R, R) in the wrapper (cheap).
    return out2d.reshape(B, R, cout, R).transpose(0, 2, 1, 3)


# ---------------------------------------------------------------------------
# Pure-JAX reference for verification
# ---------------------------------------------------------------------------
def reference_forward(sec, params, *, base_res, resolution,
                      mlp_dtype=jnp.float32):
    w1, b1, w2, b2, cw, cb = params
    B = sec.shape[0]
    f = resolution // base_res
    h = jnp.dot(sec.astype(mlp_dtype), w1.astype(mlp_dtype),
                preferred_element_type=jnp.float32) + b1
    h = h * jax.nn.sigmoid(h)
    h = jnp.dot(h.astype(mlp_dtype), w2.astype(mlp_dtype),
                preferred_element_type=jnp.float32) + b2
    h = h * jax.nn.sigmoid(h)
    m = h.reshape(B, 1, base_res, base_res)
    m = jnp.repeat(m, cw.shape[1], axis=1)
    up = jnp.repeat(jnp.repeat(m, f, axis=2), f, axis=3)
    out = lax.conv_general_dilated(
        up, cw, window_strides=(1, 1), padding="SAME",
        dimension_numbers=("NCHW", "OIHW", "NCHW"))
    return out + cb.reshape(1, -1, 1, 1)


def init_params(key, secret_size, base_res):
    hidden = base_res * base_res
    k1, k2, k3, k4 = jax.random.split(key, 4)
    # PyTorch nn.Linear default: U(-1/sqrt(fan_in), 1/sqrt(fan_in)).
    s1 = 1.0 / jnp.sqrt(secret_size)
    s2 = 1.0 / jnp.sqrt(hidden)
    w1 = jax.random.uniform(k1, (secret_size, hidden), jnp.float32, -s1, s1)
    b1 = jax.random.uniform(k2, (hidden,), jnp.float32, -s1, s1)
    w2 = jax.random.uniform(k3, (hidden, hidden), jnp.float32, -s2, s2)
    b2 = jax.random.uniform(k4, (hidden,), jnp.float32, -s2, s2)
    # zero_module(conv_nd(2, 4, 4, 3, padding=1)) -> all-zero weights & bias.
    cw = jnp.zeros((4, 4, 3, 3), jnp.float32)
    cb = jnp.zeros((4,), jnp.float32)
    return (w1, b1, w2, b2, cw, cb)


if __name__ == "__main__":
    # Small shapes consistent with the module: secret_size=16, base_res=16,
    # resolution=64 (upsample factor 4), batch=4 (-> batch tile 2, grid 2).
    secret_size, base_res, resolution, batch = 16, 16, 64, 4

    key = jax.random.PRNGKey(0)
    kp, kx, kcw, kcb = jax.random.split(key, 4)
    params = init_params(kp, secret_size, base_res)
    sec = jax.random.normal(kx, (batch, secret_size), jnp.float32)

    # The module zero-initializes the conv (zeros == zeros would hide bugs),
    # so validate the full arithmetic with random conv weights/bias, then also
    # run the module-faithful (zero-conv) config.
    w1, b1, w2, b2, _, _ = params
    cw = 0.1 * jax.random.normal(kcw, (4, 4, 3, 3), jnp.float32)
    cb = 0.1 * jax.random.normal(kcb, (4,), jnp.float32)
    test_params = (w1, b1, w2, b2, cw, cb)

    # 1) Full-precision MLP path: tight match against the f32 reference.
    out32 = jax.block_until_ready(secret_encoder_forward(
        sec, test_params, base_res=base_res, resolution=resolution,
        mlp_dtype=jnp.float32))
    ref32 = reference_forward(sec, test_params, base_res=base_res,
                              resolution=resolution, mlp_dtype=jnp.float32)
    assert out32.shape == (batch, 4, resolution, resolution), out32.shape
    err32 = float(jnp.max(jnp.abs(out32 - ref32)))
    assert jnp.allclose(out32, ref32, atol=1e-3, rtol=1e-3), f"f32 mismatch {err32}"

    # 2) Default bf16-MLP path (MXU-friendly) vs a bf16-matched reference.
    out16 = jax.block_until_ready(secret_encoder_forward(
        sec, test_params, base_res=base_res, resolution=resolution))
    ref16 = reference_forward(sec, test_params, base_res=base_res,
                              resolution=resolution, mlp_dtype=jnp.bfloat16)
    err16 = float(jnp.max(jnp.abs(out16 - ref16)))
    assert jnp.allclose(out16, ref16, atol=1e-2, rtol=1e-2), f"bf16 mismatch {err16}"

    # 3) Module-faithful forward (zero-initialized conv -> all-zero output).
    out0 = jax.block_until_ready(secret_encoder_forward(
        sec, params, base_res=base_res, resolution=resolution))
    assert jnp.allclose(out0, 0.0), "zero-init conv should give zero output"

    print("KERNEL_OK")
</pallas_src>

<mosaic_0001>
module attributes {stable_mosaic.version = 11 : i64} {
  func.func @secret_encoder_kernel(%arg0: i32, %arg1: memref<4x16xf32, #tpu.memory_space<vmem>>, %arg2: memref<16x256xf32, #tpu.memory_space<vmem>>, %arg3: memref<1x256xf32, #tpu.memory_space<vmem>>, %arg4: memref<256x256xf32, #tpu.memory_space<vmem>>, %arg5: memref<1x256xf32, #tpu.memory_space<vmem>>, %arg6: memref<32x2xf32, #tpu.memory_space<vmem>>, %arg7: memref<32x256xf32, #tpu.memory_space<vmem>>, %arg8: memref<256x768xf32, #tpu.memory_space<vmem>>, %arg9: memref<3x128x32xf32, #tpu.memory_space<vmem>>, %arg10: memref<1x256xf32, #tpu.memory_space<vmem>>, %arg11: memref<128x256xf32, #tpu.memory_space<vmem>>) attributes {dimension_semantics = [#tpu.dimension_semantics<parallel>], iteration_bounds = array<i64: 2>, scalar_prefetch = 0 : i64, scratch_operands = 0 : i64, tpu.core_type = #tpu.core_type<tc>, window_params = [{pipeline_mode = #tpu.pipeline_mode<synchronous>, transform_indices = @transform_0, window_bounds = array<i64: 4, 16>}, {pipeline_mode = #tpu.pipeline_mode<synchronous>, transform_indices = @transform_1, window_bounds = array<i64: 16, 256>}, {pipeline_mode = #tpu.pipeline_mode<synchronous>, transform_indices = @transform_2, window_bounds = array<i64: 1, 256>}, {pipeline_mode = #tpu.pipeline_mode<synchronous>, transform_indices = @transform_3, window_bounds = array<i64: 256, 256>}, {pipeline_mode = #tpu.pipeline_mode<synchronous>, transform_indices = @transform_4, window_bounds = array<i64: 1, 256>}, {pipeline_mode = #tpu.pipeline_mode<synchronous>, transform_indices = @transform_5, window_bounds = array<i64: 32, 2>}, {pipeline_mode = #tpu.pipeline_mode<synchronous>, transform_indices = @transform_6, window_bounds = array<i64: 32, 256>}, {pipeline_mode = #tpu.pipeline_mode<synchronous>, transform_indices = @transform_7, window_bounds = array<i64: 256, 768>}, {pipeline_mode = #tpu.pipeline_mode<synchronous>, transform_indices = @transform_8, window_bounds = array<i64: 3, 128, 32>}, {pipeline_mode = #tpu.pipeline_mode<synchronous>, transform_indices = @transform_9, window_bounds = array<i64: 1, 256>}, {transform_indices = @transform_10, window_bounds = array<i64: 128, 256>}]} {
    %c2_i32 = arith.constant 2 : i32
    %0 = arith.muli %arg0, %c2_i32 : i32
    %1 = tpu.assume_multiple %0, 2 : i32
    %2 = arith.index_cast %1 : i32 to index
    %c0 = arith.constant 0 : index
    %3 = vector.load %arg1[%2, %c0] : memref<4x16xf32, #tpu.memory_space<vmem>>, vector<2x16xf32>
    %c0_0 = arith.constant 0 : index
    %c0_1 = arith.constant 0 : index
    %4 = vector.load %arg2[%c0_0, %c0_1] : memref<16x256xf32, #tpu.memory_space<vmem>>, vector<16x256xf32>
    %cst = arith.constant dense<0.000000e+00> : vector<2x256xf32>
    %5 = tpu.matmul %3, %4, %cst {dimension_numbers = #tpu.dot_dimension_numbers<[1], [0], [0], [1], [0, 0, 1, 1], [], []>} : vector<2x16xf32>, vector<16x256xf32>, vector<2x256xf32> -> vector<2x256xf32>
    %c0_2 = arith.constant 0 : index
    %c0_3 = arith.constant 0 : index
    %6 = vector.load %arg3[%c0_2, %c0_3] : memref<1x256xf32, #tpu.memory_space<vmem>>, vector<1x256xf32>
    %7 = vector.broadcast %6 : vector<1x256xf32> to vector<2x256xf32>
    %8 = arith.addf %5, %7 : vector<2x256xf32>
    %9 = arith.negf %8 : vector<2x256xf32>
    %10 = math.exp %9 : vector<2x256xf32>
    %cst_4 = arith.constant 1.000000e+00 : f32
    %11 = vector.broadcast %cst_4 : f32 to vector<2x256xf32>
    %12 = arith.addf %11, %10 : vector<2x256xf32>
    %13 = arith.divf %11, %12 : vector<2x256xf32>
    %14 = arith.mulf %8, %13 : vector<2x256xf32>
    %c0_5 = arith.constant 0 : index
    %c0_6 = arith.constant 0 : index
    %15 = vector.load %arg4[%c0_5, %c0_6] : memref<256x256xf32, #tpu.memory_space<vmem>>, vector<256x256xf32>
    %cst_7 = arith.constant dense<0.000000e+00> : vector<2x256xf32>
    %16 = tpu.matmul %14, %15, %cst_7 {dimension_numbers = #tpu.dot_dimension_numbers<[1], [0], [0], [1], [0, 0, 1, 1], [], []>} : vector<2x256xf32>, vector<256x256xf32>, vector<2x256xf32> -> vector<2x256xf32>
    %c0_8 = arith.constant 0 : index
    %c0_9 = arith.constant 0 : index
    %17 = vector.load %arg5[%c0_8, %c0_9] : memref<1x256xf32, #tpu.memory_space<vmem>>, vector<1x256xf32>
    %18 = vector.broadcast %17 : vector<1x256xf32> to vector<2x256xf32>
    %19 = arith.addf %16, %18 : vector<2x256xf32>
    %20 = arith.negf %19 : vector<2x256xf32>
    %21 = math.exp %20 : vector<2x256xf32>
    %cst_10 = arith.constant 1.000000e+00 : f32
    %22 = vector.broadcast %cst_10 : f32 to vector<2x256xf32>
    %23 = arith.addf %22, %21 : vector<2x256xf32>
    %24 = arith.divf %22, %23 : vector<2x256xf32>
    %25 = arith.mulf %19, %24 : vector<2x256xf32>
    %c0_11 = arith.constant 0 : index
    %c0_12 = arith.constant 0 : index
    %26 = vector.load %arg6[%c0_11, %c0_12] : memref<32x2xf32, #tpu.memory_space<vmem>>, vector<32x2xf32>
    %cst_13 = arith.constant dense<0.000000e+00> : vector<32x256xf32>
    %27 = tpu.matmul %26, %25, %cst_13 {dimension_numbers = #tpu.dot_dimension_numbers<[1], [0], [0], [1], [0, 0, 1, 1], [], []>} : vector<32x2xf32>, vector<2x256xf32>, vector<32x256xf32> -> vector<32x256xf32>
    %c0_14 = arith.constant 0 : index
    %c0_15 = arith.constant 0 : index
    %28 = vector.load %arg7[%c0_14, %c0_15] : memref<32x256xf32, #tpu.memory_space<vmem>>, vector<32x256xf32>
    %29 = arith.mulf %27, %28 : vector<32x256xf32>
    %c0_16 = arith.constant 0 : index
    %c0_17 = arith.constant 0 : index
    %30 = vector.load %arg8[%c0_16, %c0_17] : memref<256x768xf32, #tpu.memory_space<vmem>>, vector<256x768xf32>
    %cst_18 = arith.constant dense<0.000000e+00> : vector<32x768xf32>
    %31 = tpu.matmul %29, %30, %cst_18 {dimension_numbers = #tpu.dot_dimension_numbers<[1], [0], [0], [1], [0, 0, 1, 1], [], []>} : vector<32x256xf32>, vector<256x768xf32>, vector<32x768xf32> -> vector<32x768xf32>
    %c0_19 = arith.constant 0 : index
    %c0_20 = arith.constant 0 : index
    %32 = vector.load %arg10[%c0_19, %c0_20] : memref<1x256xf32, #tpu.memory_space<vmem>>, vector<1x256xf32>
    %c0_21 = arith.constant 0 : index
    %c0_22 = arith.constant 0 : index
    %c0_23 = arith.constant 0 : index
    %33 = vector.load %arg9[%c0_21, %c0_22, %c0_23] : memref<3x128x32xf32, #tpu.memory_space<vmem>>, vector<1x128x32xf32>
    %34 = vector.shape_cast %33 : vector<1x128x32xf32> to vector<128x32xf32>
    %35 = vector.extract_strided_slice %31 {offsets = [0, 0], sizes = [32, 256], strides = [1, 1]} : vector<32x768xf32> to vector<32x256xf32>
    %cst_24 = arith.constant dense<0.000000e+00> : vector<128x256xf32>
    %36 = tpu.matmul %34, %35, %cst_24 {dimension_numbers = #tpu.dot_dimension_numbers<[1], [0], [0], [1], [0, 0, 1, 1], [], []>} : vector<128x32xf32>, vector<32x256xf32>, vector<128x256xf32> -> vector<128x256xf32>
    %37 = vector.broadcast %32 : vector<1x256xf32> to vector<128x256xf32>
    %38 = arith.addf %37, %36 : vector<128x256xf32>
    %c1 = arith.constant 1 : index
    %c0_25 = arith.constant 0 : index
    %c0_26 = arith.constant 0 : index
    %39 = vector.load %arg9[%c1, %c0_25, %c0_26] : memref<3x128x32xf32, #tpu.memory_space<vmem>>, vector<1x128x32xf32>
    %40 = vector.shape_cast %39 : vector<1x128x32xf32> to vector<128x32xf32>
    %41 = vector.extract_strided_slice %31 {offsets = [0, 256], sizes = [32, 256], strides = [1, 1]} : vector<32x768xf32> to vector<32x256xf32>
    %cst_27 = arith.constant dense<0.000000e+00> : vector<128x256xf32>
    %42 = tpu.matmul %40, %41, %cst_27 {dimension_numbers = #tpu.dot_dimension_numbers<[1], [0], [0], [1], [0, 0, 1, 1], [], []>} : vector<128x32xf32>, vector<32x256xf32>, vector<128x256xf32> -> vector<128x256xf32>
    %43 = arith.addf %38, %42 : vector<128x256xf32>
    %c2 = arith.constant 2 : index
    %c0_28 = arith.constant 0 : index
    %c0_29 = arith.constant 0 : index
    %44 = vector.load %arg9[%c2, %c0_28, %c0_29] : memref<3x128x32xf32, #tpu.memory_space<vmem>>, vector<1x128x32xf32>
    %45 = vector.shape_cast %44 : vector<1x128x32xf32> to vector<128x32xf32>
    %46 = vector.extract_strided_slice %31 {offsets = [0, 512], sizes = [32, 256], strides = [1, 1]} : vector<32x768xf32> to vector<32x256xf32>
    %cst_30 = arith.constant dense<0.000000e+00> : vector<128x256xf32>
    %47 = tpu.matmul %45, %46, %cst_30 {dimension_numbers = #tpu.dot_dimension_numbers<[1], [0], [0], [1], [0, 0, 1, 1], [], []>} : vector<128x32xf32>, vector<32x256xf32>, vector<128x256xf32> -> vector<128x256xf32>
    %48 = arith.addf %43, %47 : vector<128x256xf32>
    %c0_31 = arith.constant 0 : index
    %c0_32 = arith.constant 0 : index
    %49 = vector.load %arg11[%c0_31, %c0_32] : memref<128x256xf32, #tpu.memory_space<vmem>>, vector<128x256xf32>
    tpu.vector_store %arg11[%c0_31, %c0_32], %48 {strides = array<i32>} : memref<128x256xf32, #tpu.memory_space<vmem>>, vector<128x256xf32>,
    return
  }
  func.func @transform_0(%arg0: i32) -> (i32, i32) {
    %c0_i32 = arith.constant 0 : i32
    %c0_i32_0 = arith.constant 0 : i32
    %c0_i32_1 = arith.constant 0 : i32
    return %c0_i32, %c0_i32_0 : i32, i32
  }
  func.func @transform_1(%arg0: i32) -> (i32, i32) {
    %c0_i32 = arith.constant 0 : i32
    %c0_i32_0 = arith.constant 0 : i32
    %c0_i32_1 = arith.constant 0 : i32
    return %c0_i32, %c0_i32_0 : i32, i32
  }
  func.func @transform_2(%arg0: i32) -> (i32, i32) {
    %c0_i32 = arith.constant 0 : i32
    %c0_i32_0 = arith.constant 0 : i32
    %c0_i32_1 = arith.constant 0 : i32
    return %c0_i32, %c0_i32_0 : i32, i32
  }
  func.func @transform_3(%arg0: i32) -> (i32, i32) {
    %c0_i32 = arith.constant 0 : i32
    %c0_i32_0 = arith.constant 0 : i32
    %c0_i32_1 = arith.constant 0 : i32
    return %c0_i32, %c0_i32_0 : i32, i32
  }
  func.func @transform_4(%arg0: i32) -> (i32, i32) {
    %c0_i32 = arith.constant 0 : i32
    %c0_i32_0 = arith.constant 0 : i32
    %c0_i32_1 = arith.constant 0 : i32
    return %c0_i32, %c0_i32_0 : i32, i32
  }
  func.func @transform_5(%arg0: i32) -> (i32, i32) {
    %c0_i32 = arith.constant 0 : i32
    %c0_i32_0 = arith.constant 0 : i32
    %c0_i32_1 = arith.constant 0 : i32
    return %c0_i32, %c0_i32_0 : i32, i32
  }
  func.func @transform_6(%arg0: i32) -> (i32, i32) {
    %c0_i32 = arith.constant 0 : i32
    %c0_i32_0 = arith.constant 0 : i32
    %c0_i32_1 = arith.constant 0 : i32
    return %c0_i32, %c0_i32_0 : i32, i32
  }
  func.func @transform_7(%arg0: i32) -> (i32, i32) {
    %c0_i32 = arith.constant 0 : i32
    %c0_i32_0 = arith.constant 0 : i32
    %c0_i32_1 = arith.constant 0 : i32
    return %c0_i32, %c0_i32_0 : i32, i32
  }
  func.func @transform_8(%arg0: i32) -> (i32, i32, i32) {
    %c0_i32 = arith.constant 0 : i32
    %c0_i32_0 = arith.constant 0 : i32
    %c0_i32_1 = arith.constant 0 : i32
    %c0_i32_2 = arith.constant 0 : i32
    return %c0_i32, %c0_i32_0, %c0_i32_1 : i32, i32, i32
  }
  func.func @transform_9(%arg0: i32) -> (i32, i32) {
    %c0_i32 = arith.constant 0 : i32
    %c0_i32_0 = arith.constant 0 : i32
    %c0_i32_1 = arith.constant 0 : i32
    return %c0_i32, %c0_i32_0 : i32, i32
  }
  func.func @transform_10(%arg0: i32) -> (i32, i32) {
    %c0_i32 = arith.constant 0 : i32
    %c0_i32_0 = arith.constant 0 : i32
    return %arg0, %c0_i32 : i32, i32
  }
}

</mosaic_0001>

<bundles_post_ra>
// kernel: tpu_custom_call.1
= control target key start
LH: loop header
LB: loop body
LE: loop exit
PB: predicated region body
PF: predicated region fallthrough
CT: control target
= control target key end

     0   :  { %15 = vsyncpa [#allocation3], 0  ;;  %s3754_s0 = inlined_call_operand.vmem [shape: f32[4,16], index: 0, kind: input, shape index: {}]   ;;  %s3755_s1 = inlined_call_operand.hbm [shape: f32[16,256], index: 1, kind: input, shape index: {}]   ;;  %s3756_s2 = inlined_call_operand.vmem [shape: f32[1,256], index: 2, kind: input, shape index: {}]   ;;  %s3757_s3 = inlined_call_operand.vmem [shape: f32[256,256], index: 3, kind: input, shape index: {}]   ;;  %s3758_s4 = inlined_call_operand.vmem [shape: f32[1,256], index: 4, kind: input, shape index: {}]   ;;  %s3759_s5 = inlined_call_operand.vmem [shape: f32[32,2], index: 5, kind: input, shape index: {}]   ;;  %s3760_s6 = inlined_call_operand.hbm [shape: f32[32,256], index: 6, kind: input, shape index: {}]   ;;  %s3761_s7 = inlined_call_operand.hbm [shape: f32[256,768], index: 7, kind: input, shape index: {}]   ;;  %s3762_s8 = inlined_call_operand.vmem [shape: f32[3,128,32], index: 8, kind: input, shape index: {}]   ;;  %s3763_s9 = inlined_call_operand.vmem [shape: f32[1,256], index: 9, kind: input, shape index: {}]   ;;  %s3764_s10 = inlined_call_operand.hbm [shape: f32[256,256], index: 10, kind: output, shape index: {}]  }
   0x1   :  { %16 = vsyncpa [#allocation6], 0 }
   0x2   :  { %17 = vsyncpa [#allocation4], 0 }
   0x3   :  { %19 = vsyncpa [#allocation4 + $0x1], 0  ;;  %s2965_s13 = smov 0   ;;  %s2967_s14 = smov 0  }
   0x4   :  { %s2969_s15 = smov 0   ;;  %s2971_s16 = smov 0  }
   0x5 LB: > { %3774 = sst [smem:[#allocation12_spill]] %s2885_s13  ;;  %s2986_s17 = sadd.s32 4294967295, %s2897_s16   ;;  %s2897_s16 = sphi %s2971_s16, %s3795_s16   ;;  %s2893_s15 = sphi %s2969_s15, %s3797_s15   ;;  %s2889_s14 = sphi %s2967_s14, %s3799_s14   ;;  %s2885_s13 = sphi %s2965_s13, %s3798_s13  }
   0x6   : > { %3775 = sst [smem:[#allocation13_spill]] %s2893_s15  ;;  %s2156_s18 = sadd.s32 4294967294, %s2897_s16  }
   0x7   : > { %3776 = sst [smem:[#allocation14_spill]] %s2897_s16  ;;  %s2990_s19 = sadd.s32 1, %s2897_s16  }
   0x8   : > { %3777 = sst [smem:[#allocation15_spill]] %s2990_s19  ;;  %s242_s20 = sadd.s32 1, %s2893_s15 }
   0x9   : > { %s239_s21 = ssub.s32 %s2897_s16, %s2990_s19  ;;  %p252_p0 = scmp.ne.s32.totalorder %s2893_s15, %s2889_s14 }
   0xa   : > { %p240_p1 = scmp.eq.s32.totalorder %s239_s21, 0  ;;  %p253_p2 = scmp.eq.s32.totalorder %s2986_s17, 1 }
   0xb   : > { %p258_p3 = scmp.ne.s32.totalorder %s2889_s14, %s2885_s13  ;;  %p259_p4 = scmp.eq.s32.totalorder %s2156_s18, 1 }
   0xc   : > { %s3001_s22 = scalar_select %p240_p1, %s2893_s15, %s242_s20  }
   0xd   : > { %p3003_p5 = por %p253_p2, %p252_p0  ;;  %p3007_p6 = por %p259_p4, %p258_p3 }
   0xe   : > { %3778 = sst [smem:[#allocation16_spill]] %s3001_s22  ;;  %p2157_p7 = scmp.ge.s32.totalorder %s2897_s16, 1 }
   0xf   : > { %s3779_s23 = scalar_select %p3003_p5, 1, 0 }
  0x10   : > { %s3780_s24 = scalar_select %p3007_p6, 1, 0 }
  0x11   : > { %p266_p8 = scmp.lt.s32.totalorder %s2897_s16, 3  ;;  %p3766_p9 = scmp.eq.s32.totalorder %s2986_s17, 0 }
  0x12   : > { %3781 = sst [smem:[#allocation17_spill]] %s3780_s24  ;;  %s2899_s26 = smov [#allocation5]  }
  0x13   : > { %p3014_p10 = pnand %p2157_p7, %p266_p8  ;;  %s306_s27 = sshll.u32 %s2899_s26, 4  ;;  %s3020_s27 = int_to_ptr.vmem [resolvable:$true] %s306_s27 }
  0x14   : > { %s2900_s29 = smov [#allocation2]   ;;  %s2901_s11 = smov [#allocation7]  }
  0x15   : > { %s3782_s25 = scalar_select %p3014_p10, 1, 0 }
  0x16   : > { %p2664_p11 = pneg %p3014_p10  ;;  %s281_s30 = sshll.u32 %s2900_s29, 4  ;;  %s3028_s30 = int_to_ptr.vmem [resolvable:$true] %s281_s30 }
  0x17   : > { %s3030_s12 = sshll.u32 %s2901_s11, 4  ;;  %s2743_s21 = scalar_lea.hbm %s3760_s6, 1024  ;;  %s320_s12 = int_to_ptr.vmem [resolvable:$true] %s3030_s12 }
  0x18   : > { %p3024_p12 = pnand %p3766_p9, %p2664_p11  ;;  %p2744_p13 = scmp.ne.s32.totalorder %s3760_s6, %s2743_s21 }
  0x19   : > { %p2750_p3 = scmp.lt.u32.totalorder %s2743_s21, %s3760_s6 }
  0x1a   : > { %p3040_p0 = pneg %p3024_p12 }
  0x1c   : > { %p2746_p1 = pnand %p3040_p0, %p2744_p13 }
  0x1e   : > { %p2747_p2 = pneg %p2746_p1 }
  0x20   : > { %p2752_p4 = pnand %p2750_p3, %p2747_p2 }
  0x22   : > { %2755 = shalt.err (!%p2752_p4)
}
  0x23   : > { %s2756_s22 = scalar_lea.vmem %s3020_s27, 1024  ;;  %p2764_p9 = scmp.lt.s32.totalorder %s3020_s27, %s3020_s27 }
  0x24   : > { %p2757_p7 = scmp.ne.s32.totalorder %s3020_s27, %s2756_s22  ;;  %p2765_p6 = scmp.lt.s32.totalorder %s2756_s22, %s2756_s22 }
  0x26   : > { %p2759_p8 = pnand %p2757_p7, %p3040_p0  ;;  %p2766_p13 = por %p2765_p6, %p2764_p9 }
  0x28   : > { %p2760_p11 = pneg %p2759_p8 }
  0x2a   : > { %p2767_p1 = pnand %p2766_p13, %p2760_p11 }
  0x2c   : > { %2770 = shalt.err (!%p2767_p1)
}
  0x2d   : > { %s2902_s18 = smov 256   ;;  %s2903_s20 = smov 16  }
  0x2e   : > { %2670 = dma.hbm_to_vmem [thread:$0]  (!%p3024_p12), %s3760_s6, 1024, %s3020_s27, [#allocation6], %s2902_s18, %s2902_s18, %s2903_s20  }
  0x2f   : > { %s2771_s19 = scalar_lea.hbm %s3755_s1, 512 }
  0x30   : > { %p2772_p6 = scmp.ne.s32.totalorder %s3755_s1, %s2771_s19  ;;  %p2778_p3 = scmp.lt.u32.totalorder %s2771_s19, %s3755_s1 }
  0x32   : > { %p2774_p9 = pnand %p2772_p6, %p3040_p0 }
  0x34   : > { %p2775_p2 = pneg %p2774_p9 }
  0x36   : > { %p2780_p4 = pnand %p2778_p3, %p2775_p2 }
  0x38   : > { %2783 = shalt.err (!%p2780_p4)
}
  0x39   : > { %s2784_s27 = scalar_lea.vmem %s3028_s30, 512  ;;  %p2792_p13 = scmp.lt.s32.totalorder %s3028_s30, %s3028_s30 }
  0x3a   : > { %p2785_p7 = scmp.ne.s32.totalorder %s3028_s30, %s2784_s27  ;;  %p2793_p1 = scmp.lt.s32.totalorder %s2784_s27, %s2784_s27 }
  0x3c   : > { %p2787_p8 = pnand %p2785_p7, %p3040_p0  ;;  %p2794_p6 = por %p2793_p1, %p2792_p13 }
  0x3e   : > { %p2788_p11 = pneg %p2787_p8 }
  0x40   : > { %p2795_p9 = pnand %p2794_p6, %p2788_p11 }
  0x42   : > { %2798 = shalt.err (!%p2795_p9)
}
  0x43   : > { %2667 = dma.hbm_to_vmem [thread:$0]  (!%p3024_p12), %s3755_s1, 512, %s3028_s30, [#allocation3], %s2902_s18, %s2902_s18, %s2903_s20  }
  0x44   : > { %s2799_s21 = scalar_lea.hbm %s3761_s7, 24576 }
  0x45   : > { %p2800_p2 = scmp.ne.s32.totalorder %s3761_s7, %s2799_s21  ;;  %p2806_p7 = scmp.lt.u32.totalorder %s2799_s21, %s3761_s7 }
  0x47   : > { %p2802_p3 = pnand %p2800_p2, %p3040_p0 }
  0x49   : > { %p2803_p4 = pneg %p2802_p3 }
  0x4b   : > { %p2808_p8 = pnand %p2806_p7, %p2803_p4 }
  0x4d   : > { %2811 = shalt.err (!%p2808_p8)
}
  0x4e   : > { %s2812_s27 = scalar_lea.vmem %s320_s12, 24576  ;;  %p2820_p6 = scmp.lt.s32.totalorder %s320_s12, %s320_s12 }
  0x4f   : > { %p2813_p11 = scmp.ne.s32.totalorder %s320_s12, %s2812_s27  ;;  %p2821_p9 = scmp.lt.s32.totalorder %s2812_s27, %s2812_s27 }
  0x51   : > { %p2815_p13 = pnand %p2813_p11, %p3040_p0  ;;  %p2822_p5 = por %p2821_p9, %p2820_p6 }
  0x53   : > { %p2816_p1 = pneg %p2815_p13 }
  0x55   : > { %p2823_p10 = pnand %p2822_p5, %p2816_p1 }
  0x57   : > { %2826 = shalt.err (!%p2823_p10)
}
  0x58   : > { %s2904_s30 = smov 768   ;;  %s2905_s18 = smov 48  }
  0x59   : > { %2673 = dma.hbm_to_vmem [thread:$0]  (!%p3024_p12), %s3761_s7, 24576, %s320_s12, [#allocation6], %s2904_s30, %s2904_s30, %s2905_s18  }
  0x5a   : > { %p3785_p2 = scmp.ne.s32.totalorder %s3782_s25, 0 }
  0x5b   : > { %p3786_p3 = scmp.eq.s32.totalorder (!%p3785_p2), %s2986_s17, 0 }
  0x5c   : > { %341 = sbr.rel (%p3785_p2) target bundleno = 1465 (0x5b9), region = 60 }
  0x63   : > { %2872 = dma.done.wait (%p3786_p3), [#allocation3], 512   ;;  %p3787_p0 = pmov %p3786_p3 }
  0x65   : > { %2874 = vsyncadd (%p3787_p0), [#allocation3], 4294966784  ;;  %p3788_p5 = pmov %p3787_p0 }
  0x66   : > { %p3789_p10 = pmov %p3787_p0 }
  0x67   : > { %2876 = dma.done.wait (%p3788_p5), [#allocation6], 25600  }
  0x68   : > { %2878 = vsyncadd (%p3789_p10), [#allocation6], 4294941696  ;;  %v2906_v0 = vmov 0.0   ;;  %s2166_s15 = sshll.u32 %s2986_s17, 1  ;;  %v387_v1 = vld [vmem:[#allocation2 + $0x8] sm:$0xff]  ;;  %v389_v2 = vld [vmem:[#allocation2 + $0x18] sm:$0xff] }
  0x69   : > { %470 = vmatprep.mubr.f32.mxu0 %v2906_v0  ;;  %s384_s12 = scalar_lea.vmem %s3754_s0, %s2166_s15  ;;  %v386_v3 = vld [vmem:[#allocation2] sm:$0xff]  ;;  %v2266_v4 = vpack.c.bf16 %v389_v2, %v387_v1  ;;  %v388_v5 = vld [vmem:[#allocation2 + $0x10] sm:$0xff]  ;;  %v492_v6 = vld [vmem:[%s3757_s3 + $0x8] sm:$0xff]  ;;  %vm402_vm0 = vcmask 130048   ;;  %vm669_vm1 = vcmask 1041408   ;;  %vm656_vm2 = vcmask 15360  }
  0x6a   : > { %v2268_v7 = vpack.c.bf16 %v388_v5, %v386_v3  ;;  %v385_v8 = vld [vmem:[%s384_s12] sm:$0x3]  ;;  %v494_v9 = vld [vmem:[%s3757_s3 + $0x18] sm:$0xff]  ;;  %v493_v11 = vld [vmem:[%s3757_s3 + $0x10] sm:$0xff]  ;;  %vm1257_vm3 = vcmask 261120   ;;  %s379_s16 = sand.u32 1, %s2889_s14  }
  0x6b   : > { %v491_v10 = vld [vmem:[%s3757_s3] sm:$0xff]  ;;  %2267 = vmatprep.subr.bf16.mxu0 %v2266_v4  ;;  %v2270_v12 = vpack.c.bf16 %v494_v9, %v492_v6  ;;  %v496_v14 = vld [vmem:[%s3757_s3 + $0x28] sm:$0xff]  ;;  %v498_v15 = vld [vmem:[%s3757_s3 + $0x38] sm:$0xff]  ;;  %s2165_s19 = sshll.u32 %s379_s16, 8  ;;  %s2265_s21 = sshll.u32 %s2986_s17, 12 }
  0x6c   : > { %v2272_v13 = vpack.c.bf16 %v493_v11, %v491_v10  ;;  %v495_v16 = vld [vmem:[%s3757_s3 + $0x20] sm:$0xff]  ;;  %2269 = vmatpush1.bf16.msra.mxu0 %v2268_v7  ;;  %v2274_v17 = vpack.c.bf16 %v498_v15, %v496_v14  ;;  %v497_v18 = vld [vmem:[%s3757_s3 + $0x30] sm:$0xff]  ;;  %v500_v19 = vld [vmem:[%s3757_s3 + $0x48] sm:$0xff]  ;;  %s3640_s24 = scalar_lea.vmem [#allocation8], %s2165_s19  ;;  %s3704_s22 = scalar_lea.hbm %s3764_s10, %s2265_s21 }
  0x6d   : > { %v502_v20 = vld [vmem:[%s3757_s3 + $0x58] sm:$0xff]  ;;  %2271 = vmatprep.subr.bf16.mxu1 %v2270_v12  ;;  %v2276_v21 = vpack.c.bf16 %v497_v18, %v495_v16  ;;  %v499_v23 = vld [vmem:[%s3757_s3 + $0x40] sm:$0xff]  ;;  %v501_v24 = vld [vmem:[%s3757_s3 + $0x50] sm:$0xff]  ;;  %s2073_s26 = sshll.u32 %s3640_s24, 4  ;;  %s3713_s17 = scalar_lea.sflag [#allocation4], %s379_s16  ;;  %s3706_s26 = int_to_ptr.vmem [resolvable:$true] %s2073_s26 }
  0x6e   : > { %2273 = vmatpush1.bf16.msra.mxu1 %v2272_v13  ;;  %v2278_v22 = vpack.c.bf16 %v502_v20, %v500_v19  ;;  %v504_v25 = vld [vmem:[%s3757_s3 + $0x68] sm:$0xff]  ;;  %v506_v26 = vld [vmem:[%s3757_s3 + $0x78] sm:$0xff]  ;;  %v2280_v27 = vpack.c.bf16 %v501_v24, %v499_v23  ;;  %v503_v29 = vld [vmem:[%s3757_s3 + $0x60] sm:$0xff]  ;;  %s2827_s27 = scalar_lea.vmem %s3706_s26, 4096  ;;  %p3790_p4 = scmp.ne.s32.totalorder %s3779_s23, 0 }
  0x6f   : > { %2167 = vmatmul.mubr.msk.f32.vlgmr.msra.gmra.mrb[0].mxu0 %vm402_vm0, %v385_v8  ;;  %2275 = vmatprep.subr.bf16.mxu1 %v2274_v17  ;;  %v2282_v28 = vpack.c.bf16 %v506_v26, %v504_v25  ;;  %v505_v30 = vld [vmem:[%s3757_s3 + $0x70] sm:$0xff]  ;;  %v508_v31 = vld [vmem:[%s3757_s3 + $0x88] sm:$0xff]  ;;  %v510_v32 = vld [vmem:[%s3757_s3 + $0x98] sm:$0xff]  ;;  %p2828_p12 = scmp.ne.s32.totalorder %s3706_s26, %s2827_s27  ;;  %s2907_s30 = smov [#allocation8]  }
  0x70   : > { %740 = vmatprep.mubr.f32.mxu0 %v2906_v0  ;;  %v2284_v33 = vpack.c.bf16 %v505_v30, %v503_v29  ;;  %v2286_v34 = vpack.c.bf16 %v510_v32, %v508_v31  ;;  %v507_v35 = vld [vmem:[%s3757_s3 + $0x80] sm:$0xff]  ;;  %v509_v36 = vld [vmem:[%s3757_s3 + $0x90] sm:$0xff]  ;;  %v512_v37 = vld [vmem:[%s3757_s3 + $0xa8] sm:$0xff]  ;;  %s2831_s18 = sshll.u32 %s2907_s30, 4  ;;  %s2832_s18 = int_to_ptr.vmem [resolvable:$false] %s2831_s18 }
  0x71   : > { %v514_v38 = vld [vmem:[%s3757_s3 + $0xb8] sm:$0xff]  ;;  %v2288_v39 = vpack.c.bf16 %v509_v36, %v507_v35  ;;  %v511_v41 = vld [vmem:[%s3757_s3 + $0xa0] sm:$0xff]  ;;  %v513_v42 = vld [vmem:[%s3757_s3 + $0xb0] sm:$0xff]  ;;  %p2829_p7 = pnand %p2828_p12, %p3790_p4  ;;  %s2833_s20 = scalar_lea.vmem %s2832_s18, 8192 }
  0x72   : > { %2277 = vmatpush1.bf16.msra.mxu1 %v2276_v21  ;;  %v2290_v40 = vpack.c.bf16 %v514_v38, %v512_v37  ;;  %v516_v43 = vld [vmem:[%s3757_s3 + $0xc8] sm:$0xff]  ;;  %v518_v44 = vld [vmem:[%s3757_s3 + $0xd8] sm:$0xff]  ;;  %v2292_v45 = vpack.c.bf16 %v513_v42, %v511_v41  ;;  %v515_v47 = vld [vmem:[%s3757_s3 + $0xc0] sm:$0xff]  ;;  %v392_v41 = vlaneseq  ;;  %p2834_p11 = scmp.lt.s32.totalorder %s3706_s26, %s2832_s18  ;;  %p2835_p13 = scmp.lt.s32.totalorder %s2833_s20, %s2827_s27 }
  0x73   : > { %2279 = vmatprep.subr.bf16.mxu1 %v2278_v22  ;;  %v2294_v46 = vpack.c.bf16 %v518_v44, %v516_v43  ;;  %v517_v48 = vld [vmem:[%s3757_s3 + $0xd0] sm:$0xff]  ;;  %v520_v49 = vld [vmem:[%s3757_s3 + $0xe8] sm:$0xff]  ;;  %v522_v50 = vld [vmem:[%s3757_s3 + $0xf8] sm:$0xff]  ;;  %p2830_p8 = pneg %p2829_p7 }
  0x74   : > { %v2296_v51 = vpack.c.bf16 %v517_v48, %v515_v47  ;;  %v2298_v52 = vpack.c.bf16 %v522_v50, %v520_v49  ;;  %v519_v53 = vld [vmem:[%s3757_s3 + $0xe0] sm:$0xff]  ;;  %v521_v54 = vld [vmem:[%s3757_s3 + $0xf0] sm:$0xff]  ;;  %v524_v56 = vld [vmem:[%s3757_s3 + $0x108] sm:$0xff]  ;;  %v393_v42 = vshrl.u32 %v392_v41, 7  ;;  %p2836_p1 = por %p2835_p13, %p2834_p11 }
  0x75   : > { %v2300_v55 = vpack.c.bf16 %v521_v54, %v519_v53  ;;  %v526_v57 = vld [vmem:[%s3757_s3 + $0x118] sm:$0xff]  ;;  %v523_v59 = vld [vmem:[%s3757_s3 + $0x100] sm:$0xff]  ;;  %v525_v60 = vld [vmem:[%s3757_s3 + $0x110] sm:$0xff] }
  0x76   : > { %2281 = vmatpush1.bf16.msra.mxu1 %v2280_v27  ;;  %v2302_v58 = vpack.c.bf16 %v526_v57, %v524_v56  ;;  %v2304_v61 = vpack.c.bf16 %v525_v60, %v523_v59  ;;  %v528_v62 = vld [vmem:[%s3757_s3 + $0x128] sm:$0xff]  ;;  %v530_v63 = vld [vmem:[%s3757_s3 + $0x138] sm:$0xff]  ;;  %v527_v2 = vld [vmem:[%s3757_s3 + $0x120] sm:$0xff]  ;;  %v3311_v43 = vsub.s32 0, %v393_v42  ;;  %p2837_p6 = pnand %p2836_p1, %p2830_p8 }
  0x77   : > { %2283 = vmatprep.subr.bf16.mxu1 %v2282_v28  ;;  %v2306_v1 = vpack.c.bf16 %v530_v63, %v528_v62  ;;  %v529_v3 = vld [vmem:[%s3757_s3 + $0x130] sm:$0xff]  ;;  %v532_v5 = vld [vmem:[%s3757_s3 + $0x148] sm:$0xff]  ;;  %v534_v6 = vld [vmem:[%s3757_s3 + $0x158] sm:$0xff] }
  0x78   : > { %v2308_v4 = vpack.c.bf16 %v529_v3, %v527_v2  ;;  %v2310_v7 = vpack.c.bf16 %v534_v6, %v532_v5  ;;  %v531_v8 = vld [vmem:[%s3757_s3 + $0x140] sm:$0xff]  ;;  %v533_v9 = vld [vmem:[%s3757_s3 + $0x150] sm:$0xff]  ;;  %v536_v11 = vld [vmem:[%s3757_s3 + $0x168] sm:$0xff] }
  0x79   : > { %v2312_v10 = vpack.c.bf16 %v533_v9, %v531_v8  ;;  %v538_v12 = vld [vmem:[%s3757_s3 + $0x178] sm:$0xff]  ;;  %v535_v14 = vld [vmem:[%s3757_s3 + $0x160] sm:$0xff]  ;;  %v537_v15 = vld [vmem:[%s3757_s3 + $0x170] sm:$0xff] }
  0x7a   : > { %2285 = vmatpush1.bf16.msra.mxu1 %v2284_v33  ;;  %v2314_v13 = vpack.c.bf16 %v538_v12, %v536_v11  ;;  %v2316_v16 = vpack.c.bf16 %v537_v15, %v535_v14  ;;  %v540_v17 = vld [vmem:[%s3757_s3 + $0x188] sm:$0xff]  ;;  %v542_v18 = vld [vmem:[%s3757_s3 + $0x198] sm:$0xff]  ;;  %v539_v20 = vld [vmem:[%s3757_s3 + $0x180] sm:$0xff] }
  0x7b   : > { %2287 = vmatprep.subr.bf16.mxu1 %v2286_v34  ;;  %v2318_v19 = vpack.c.bf16 %v542_v18, %v540_v17  ;;  %v541_v21 = vld [vmem:[%s3757_s3 + $0x190] sm:$0xff]  ;;  %v544_v23 = vld [vmem:[%s3757_s3 + $0x1a8] sm:$0xff]  ;;  %v546_v24 = vld [vmem:[%s3757_s3 + $0x1b8] sm:$0xff] }
  0x7c   : > { %v2320_v22 = vpack.c.bf16 %v541_v21, %v539_v20  ;;  %v2322_v25 = vpack.c.bf16 %v546_v24, %v544_v23  ;;  %v543_v26 = vld [vmem:[%s3757_s3 + $0x1a0] sm:$0xff]  ;;  %v545_v27 = vld [vmem:[%s3757_s3 + $0x1b0] sm:$0xff]  ;;  %v548_v29 = vld [vmem:[%s3757_s3 + $0x1c8] sm:$0xff] }
  0x7d   : > { %v2324_v28 = vpack.c.bf16 %v545_v27, %v543_v26  ;;  %v550_v30 = vld [vmem:[%s3757_s3 + $0x1d8] sm:$0xff]  ;;  %v547_v32 = vld [vmem:[%s3757_s3 + $0x1c0] sm:$0xff]  ;;  %v549_v33 = vld [vmem:[%s3757_s3 + $0x1d0] sm:$0xff] }
  0x7e   : > { %2289 = vmatpush1.bf16.msra.mxu1 %v2288_v39  ;;  %v2326_v31 = vpack.c.bf16 %v550_v30, %v548_v29  ;;  %v2328_v34 = vpack.c.bf16 %v549_v33, %v547_v32  ;;  %v552_v35 = vld [vmem:[%s3757_s3 + $0x1e8] sm:$0xff]  ;;  %v554_v36 = vld [vmem:[%s3757_s3 + $0x1f8] sm:$0xff]  ;;  %v551_v38 = vld [vmem:[%s3757_s3 + $0x1e0] sm:$0xff] }
  0x7f   : > { %2291 = vmatprep.subr.bf16.mxu1 %v2290_v40  ;;  %v2330_v37 = vpack.c.bf16 %v554_v36, %v552_v35  ;;  %v553_v39 = vld [vmem:[%s3757_s3 + $0x1f0] sm:$0xff]  ;;  %v390_v44 = vld [vmem:[%s3756_s2] sm:$0x3]  ;;  %v782_v12 = vld [vmem:[#allocation7 + $0x8] sm:$0xff] }
  0x80   : > { %v2332_v40 = vpack.c.bf16 %v553_v39, %v551_v38  ;;  %v555_v62 = vld [vmem:[%s3758_s4] sm:$0x3]  ;;  %v794_v18 = vld [vmem:[#allocation7 + $0x68] sm:$0xff]  ;;  %v799_v27 = vld [vmem:[#allocation7 + $0x90] sm:$0xff] }
  0x81   : > { %v560_v63 = vrot.slane %v555_v62, %v3311_v43  ;;  %v781_v15 = vld [vmem:[#allocation7] sm:$0xff]  ;;  %v812_v29 = vld [vmem:[#allocation7 + $0xf8] sm:$0xff]  ;;  %v653_v30 = vld [vmem:[%s3759_s5 + $0x8] sm:$0xff] }
  0x82   : > { %2293 = vmatpush1.bf16.msra.mxu1 %v2292_v45  ;;  %v3316_v45 = vsub.s32 1, %v393_v42  ;;  %v652_v23 = vld [vmem:[%s3759_s5] sm:$0xff]  ;;  %v818_v35 = vld [vmem:[#allocation7 + $0x128] sm:$0xff]  ;;  %v824_v36 = vld [vmem:[#allocation7 + $0x158] sm:$0xff] }
  0x83   : > { %2295 = vmatprep.subr.bf16.mxu1 %v2294_v46  ;;  %v395_v46 = vrot.slane %v390_v44, %v3311_v43  ;;  %v793_v26 = vld [vmem:[#allocation7 + $0x60] sm:$0xff]  ;;  %v2346_v39 = vpack.c.bf16 %v824_v36, %v818_v35  ;;  %v823_v41 = vld [vmem:[#allocation7 + $0x150] sm:$0xff]  ;;  %v830_v42 = vld [vmem:[#allocation7 + $0x188] sm:$0xff] }
  0x84   : > { %v399_v47 = vrot.slane %v390_v44, %v3316_v45  ;;  %v805_v33 = vld [vmem:[#allocation7 + $0xc0] sm:$0xff]  ;;  %v836_v44 = vld [vmem:[#allocation7 + $0x1b8] sm:$0xff]  ;;  %v931_v35 = vld [vmem:[#allocation7 + $0x4b0] sm:$0xff] }
  0x85   : > { %v938_v36 = vld [vmem:[#allocation7 + $0x4e8] sm:$0xff] }
  0x86   : > { %2297 = vmatpush1.bf16.msra.mxu1 %v2296_v51 }
  0x87   : > { %2299 = vmatprep.subr.bf16.mxu1 %v2298_v52 }
  0x8a   : > { %2301 = vmatpush1.bf16.msra.mxu1 %v2300_v55 }
  0x8b   : > { %2303 = vmatprep.subr.bf16.mxu1 %v2302_v58 }
  0x8e   : > { %2305 = vmatpush1.bf16.msra.mxu1 %v2304_v61 }
  0x8f   : > { %2307 = vmatprep.subr.bf16.mxu1 %v2306_v1  ;;  %v564_v1 = vrot.slane %v555_v62, %v3316_v45  ;;  %v859_v62 = vld [vmem:[#allocation7 + $0x270] sm:$0xff] }
  0x92   : > { %2309 = vmatpush1.bf16.msra.mxu1 %v2308_v4 }
  0x93   : > { %2311 = vmatprep.subr.bf16.mxu1 %v2310_v7 }
  0x96   : > { %2313 = vmatpush1.bf16.msra.mxu1 %v2312_v10 }
  0x97   : > { %2315 = vmatprep.subr.bf16.mxu1 %v2314_v13  ;;  %v788_v13 = vld [vmem:[#allocation7 + $0x38] sm:$0xff] }
  0x98   : > { %v2334_v21 = vpack.c.bf16 %v788_v13, %v782_v12  ;;  %v890_v12 = vld [vmem:[#allocation7 + $0x368] sm:$0xff]  ;;  %v896_v13 = vld [vmem:[#allocation7 + $0x398] sm:$0xff] }
  0x9a   : > { %2317 = vmatpush1.bf16.msra.mxu1 %v2316_v16  ;;  %v787_v16 = vld [vmem:[#allocation7 + $0x30] sm:$0xff] }
  0x9b   : > { %2319 = vmatprep.subr.bf16.mxu1 %v2318_v19  ;;  %v800_v19 = vld [vmem:[#allocation7 + $0x98] sm:$0xff]  ;;  %v2336_v24 = vpack.c.bf16 %v787_v16, %v781_v15  ;;  %v2370_v15 = vpack.c.bf16 %v896_v13, %v890_v12  ;;  %v889_v16 = vld [vmem:[#allocation7 + $0x360] sm:$0xff] }
  0x9c   : > { %v801_v12 = vld [vmem:[#allocation7 + $0xa0] sm:$0xff] }
  0x9e   : > { %2321 = vmatpush1.bf16.msra.mxu1 %v2320_v22 }
  0x9f   : > { %2323 = vmatprep.subr.bf16.mxu1 %v2322_v25  ;;  %v2338_v25 = vpack.c.bf16 %v800_v19, %v794_v18  ;;  %v902_v18 = vld [vmem:[#allocation7 + $0x3c8] sm:$0xff]  ;;  %v908_v19 = vld [vmem:[#allocation7 + $0x3f8] sm:$0xff] }
  0xa2   : > { %2325 = vmatpush1.bf16.msra.mxu1 %v2324_v28  ;;  %v806_v28 = vld [vmem:[#allocation7 + $0xc8] sm:$0xff] }
  0xa3   : > { %2327 = vmatprep.subr.bf16.mxu1 %v2326_v31  ;;  %v2340_v31 = vpack.c.bf16 %v799_v27, %v793_v26  ;;  %v2342_v32 = vpack.c.bf16 %v812_v29, %v806_v28  ;;  %v913_v28 = vld [vmem:[#allocation7 + $0x420] sm:$0xff]  ;;  %v919_v29 = vld [vmem:[#allocation7 + $0x450] sm:$0xff] }
  0xa6   : > { %2329 = vmatpush1.bf16.msra.mxu1 %v2328_v34  ;;  %v811_v34 = vld [vmem:[#allocation7 + $0xf0] sm:$0xff] }
  0xa7   : > { %2331 = vmatprep.subr.bf16.mxu1 %v2330_v37  ;;  %v654_v37 = vld [vmem:[%s3759_s5 + $0x10] sm:$0xff]  ;;  %v2344_v38 = vpack.c.bf16 %v811_v34, %v805_v33  ;;  %v925_v34 = vld [vmem:[#allocation7 + $0x480] sm:$0xff] }
  0xaa   : > { %2333 = vmatpush1.bf16.msra.mxu1 %v2332_v40  ;;  %v817_v40 = vld [vmem:[#allocation7 + $0x120] sm:$0xff] }
 0x142   : > { %v472_v48 = vpop.f32.mrb[0].mxu0 }
 0x143   : > { %v473_v49 = vadd.f32 %v472_v48, %v395_v46  ;;  %v474_v50 = vpop.f32.mrb[1].mxu0  ;;  %v655_v46 = vld [vmem:[%s3759_s5 + $0x18] sm:$0xff]  ;;  %v2350_v48 = vpack.c.bf16 %v836_v44, %v830_v42  ;;  %v950_v42 = vld [vmem:[#allocation7 + $0x548] sm:$0xff] }
 0x144   : > { %v475_v51 = vadd.f32 %v474_v50, %v399_v47  ;;  %v2348_v47 = vpack.c.bf16 %v823_v41, %v817_v40  ;;  %v835_v50 = vld [vmem:[#allocation7 + $0x1b0] sm:$0xff]  ;;  %v937_v40 = vld [vmem:[#allocation7 + $0x4e0] sm:$0xff]  ;;  %v956_v44 = vld [vmem:[#allocation7 + $0x578] sm:$0xff] }
 0x145   : > { %v2168_v52 = vmul.f32 -1.442695, %v473_v49  ;;  %v943_v41 = vld [vmem:[#allocation7 + $0x510] sm:$0xff] }
 0x146   : > { %v2169_v53 = vmul.f32 -1.442695, %v475_v51 }
 0x147   : > { %2727 = vpow2.f32 %v2168_v52  ;;  %v848_v52 = vld [vmem:[#allocation7 + $0x218] sm:$0xff] }
 0x148   : > { %2729 = vpow2.f32 %v2169_v53 }
 0x151   : > { %v2728_v54 = vpop.eup %2727 }
 0x152   : > { %v2730_v55 = vpop.eup %2729  ;;  %v483_v56 = vadd.f32 1.0, %v2728_v54 }
 0x153   : > { %v484_v57 = vadd.f32 1.0, %v2730_v55  ;;  %v841_v55 = vld [vmem:[#allocation7 + $0x1e0] sm:$0xff] }
 0x154   : > { %2731 = vrcp.f32 %v483_v56  ;;  %v847_v56 = vld [vmem:[#allocation7 + $0x210] sm:$0xff] }
 0x155   : > { %2733 = vrcp.f32 %v484_v57  ;;  %v854_v57 = vld [vmem:[#allocation7 + $0x248] sm:$0xff] }
 0x15e   : > { %v2732_v58 = vpop.eup %2731 }
 0x15f   : > { %v2734_v59 = vpop.eup %2733  ;;  %v489_v61 = vmul.f32 %v2732_v58, %v473_v49  ;;  %v829_v49 = vld [vmem:[#allocation7 + $0x180] sm:$0xff]  ;;  %v860_v58 = vld [vmem:[#allocation7 + $0x278] sm:$0xff] }
 0x160   : > { %v490_v60 = vmul.f32 %v2734_v59, %v475_v51  ;;  %v842_v51 = vld [vmem:[#allocation7 + $0x1e8] sm:$0xff]  ;;  %v2352_v53 = vpack.c.bf16 %v835_v50, %v829_v49  ;;  %v2356_v59 = vpack.c.bf16 %v847_v56, %v841_v55  ;;  %v955_v49 = vld [vmem:[#allocation7 + $0x570] sm:$0xff] }
 0x161   : > { %v2354_v54 = vpack.c.bf16 %v848_v52, %v842_v51  ;;  %v962_v51 = vld [vmem:[#allocation7 + $0x5a8] sm:$0xff]  ;;  %v968_v52 = vld [vmem:[#allocation7 + $0x5d8] sm:$0xff]  ;;  %v967_v55 = vld [vmem:[#allocation7 + $0x5d0] sm:$0xff] }
 0x162   : > { %631 = vmatprep.mubr.f32.mxu1 %v490_v60  ;;  %v2358_v60 = vpack.c.bf16 %v860_v58, %v854_v57  ;;  %v784_v57 = vld [vmem:[#allocation7 + $0x18] sm:$0xff]  ;;  %v790_v58 = vld [vmem:[#allocation7 + $0x48] sm:$0xff] }
 0x163   : > { %632 = vmatmul.mubr.f32.vlgmr.msra.gmra.mrb[0].mxu1 %v489_v61  ;;  %v853_v61 = vld [vmem:[#allocation7 + $0x240] sm:$0xff] }
 0x164   : > { %1406 = vmatprep.mubr.f32.mxu1 %v2906_v0 }
 0x236   : > { %v633_v2 = vpop.f32.mrb[0].mxu1 }
 0x237   : > { %v634_v3 = vadd.f32 %v633_v2, %v560_v63  ;;  %v635_v4 = vpop.f32.mrb[1].mxu1  ;;  %v866_v63 = vld [vmem:[#allocation7 + $0x2a8] sm:$0xff]  ;;  %v2360_v2 = vpack.c.bf16 %v859_v62, %v853_v61  ;;  %v783_v61 = vld [vmem:[#allocation7 + $0x10] sm:$0xff]  ;;  %v789_v62 = vld [vmem:[#allocation7 + $0x40] sm:$0xff] }
 0x238   : > { %v636_v5 = vadd.f32 %v635_v4, %v564_v1  ;;  %v872_v1 = vld [vmem:[#allocation7 + $0x2d8] sm:$0xff]  ;;  %v865_v4 = vld [vmem:[#allocation7 + $0x2a0] sm:$0xff] }
 0x239   : > { %v2170_v6 = vmul.f32 -1.442695, %v634_v3 }
 0x23a   : > { %v2171_v7 = vmul.f32 -1.442695, %v636_v5 }
 0x23b   : > { %2735 = vpow2.f32 %v2170_v6  ;;  %v878_v6 = vld [vmem:[#allocation7 + $0x308] sm:$0xff] }
 0x23c   : > { %2737 = vpow2.f32 %v2171_v7  ;;  %v884_v7 = vld [vmem:[#allocation7 + $0x338] sm:$0xff] }
 0x245   : > { %v2736_v8 = vpop.eup %2735 }
 0x246   : > { %v2738_v9 = vpop.eup %2737  ;;  %v644_v10 = vadd.f32 1.0, %v2736_v8 }
 0x247   : > { %v645_v11 = vadd.f32 1.0, %v2738_v9  ;;  %v2366_v9 = vpack.c.bf16 %v884_v7, %v878_v6  ;;  %v767_v6 = vld [vmem:[#allocation5 + $0x10] sm:$0xff]  ;;  %v2400_v7 = vpack.c.bf16 %v789_v62, %v783_v61  ;;  %v868_v61 = vld [vmem:[#allocation7 + $0x2b8] sm:$0xff]  ;;  %v874_v62 = vld [vmem:[#allocation7 + $0x2e8] sm:$0xff] }
 0x248   : > { %2739 = vrcp.f32 %v644_v10  ;;  %v877_v10 = vld [vmem:[#allocation7 + $0x300] sm:$0xff] }
 0x249   : > { %2741 = vrcp.f32 %v645_v11  ;;  %v883_v11 = vld [vmem:[#allocation7 + $0x330] sm:$0xff] }
 0x252   : > { %v2740_v14 = vpop.eup %2739 }
 0x253   : > { %v2742_v17 = vpop.eup %2741  ;;  %v650_v22 = vmul.f32 %v2740_v14, %v634_v3  ;;  %v2362_v3 = vpack.c.bf16 %v872_v1, %v866_v63  ;;  %v2368_v14 = vpack.c.bf16 %v883_v11, %v877_v10  ;;  %v765_v1 = vld [vmem:[#allocation5] sm:$0xff]  ;;  %v795_v11 = vld [vmem:[#allocation7 + $0x70] sm:$0xff] }
 0x254   : > { %v651_v20 = vmul.f32 %v2742_v17, %v636_v5  ;;  %v871_v5 = vld [vmem:[#allocation7 + $0x2d0] sm:$0xff] }
 0x255   : > { %v2364_v8 = vpack.c.bf16 %v871_v5, %v865_v4  ;;  %v895_v17 = vld [vmem:[#allocation7 + $0x390] sm:$0xff] }
 0x256   : > { %2172 = vmatprep.subr.msk.mxu0 %vm669_vm1, %v651_v20  ;;  %v2372_v20 = vpack.c.bf16 %v895_v17, %v889_v16 }
 0x257   : > { %2173 = vmatpush1.msk.msra.mxu0 %vm669_vm1, %v650_v22  ;;  %v901_v22 = vld [vmem:[#allocation7 + $0x3c0] sm:$0xff] }
 0x258   : > { %2174 = vmatmul.mubr.msk.f32.vlgmr.msra.gmra.mrb[2].mxu0 %vm656_vm2, %v652_v23  ;;  %2335 = vmatprep.subr.bf16.mxu0 %v2334_v21  ;;  %v2374_v21 = vpack.c.bf16 %v908_v19, %v902_v18  ;;  %v907_v23 = vld [vmem:[#allocation7 + $0x3f0] sm:$0xff]  ;;  %v769_v19 = vld [vmem:[#allocation5 + $0x20] sm:$0xff] }
 0x259   : > { %746 = vmatprep.mubr.f32.mxu0 %v2906_v0  ;;  %2337 = vmatpush1.bf16.msra.mxu0 %v2336_v24  ;;  %v914_v24 = vld [vmem:[#allocation7 + $0x428] sm:$0xff]  ;;  %v2376_v26 = vpack.c.bf16 %v907_v23, %v901_v22  ;;  %v807_v23 = vld [vmem:[#allocation7 + $0xd0] sm:$0xff] }
 0x25a   : > { %2339 = vmatprep.subr.bf16.mxu0 %v2338_v25  ;;  %v920_v25 = vld [vmem:[#allocation7 + $0x458] sm:$0xff] }
 0x25b   : > { %v2378_v27 = vpack.c.bf16 %v920_v25, %v914_v24  ;;  %v813_v24 = vld [vmem:[#allocation7 + $0x100] sm:$0xff] }
 0x25c   : > { %2175 = vmatmul.mubr.msk.f32.gmra.mrb[4].mxu0 %vm656_vm2, %v653_v30  ;;  %v926_v30 = vld [vmem:[#allocation7 + $0x488] sm:$0xff] }
 0x25d   : > { %752 = vmatprep.mubr.f32.mxu0 %v2906_v0  ;;  %2341 = vmatpush1.bf16.msra.mxu0 %v2340_v31  ;;  %v932_v31 = vld [vmem:[#allocation7 + $0x4b8] sm:$0xff] }
 0x25e   : > { %2343 = vmatprep.subr.bf16.mxu0 %v2342_v32  ;;  %v2380_v32 = vpack.c.bf16 %v919_v29, %v913_v28  ;;  %v2382_v33 = vpack.c.bf16 %v932_v31, %v926_v30  ;;  %v771_v31 = vld [vmem:[#allocation5 + $0x30] sm:$0xff] }
 0x260   : > { %2176 = vmatmul.mubr.msk.f32.gmra.mrb[6].mxu0 %vm656_vm2, %v654_v37  ;;  %v944_v37 = vld [vmem:[#allocation7 + $0x518] sm:$0xff] }
 0x261   : > { %758 = vmatprep.mubr.f32.mxu0 %v2906_v0  ;;  %2345 = vmatpush1.bf16.msra.mxu0 %v2344_v38  ;;  %v2384_v38 = vpack.c.bf16 %v931_v35, %v925_v34  ;;  %v819_v35 = vld [vmem:[#allocation7 + $0x130] sm:$0xff] }
 0x262   : > { %2347 = vmatprep.subr.bf16.mxu0 %v2346_v39  ;;  %v2386_v39 = vpack.c.bf16 %v944_v37, %v938_v36  ;;  %v825_v36 = vld [vmem:[#allocation7 + $0x160] sm:$0xff] }
 0x264   : > { %2177 = vmatmul.mubr.msk.f32.gmra.mrb[8].mxu0 %vm656_vm2, %v655_v46  ;;  %v2388_v46 = vpack.c.bf16 %v943_v41, %v937_v40 }
 0x265   : > { %2349 = vmatpush1.bf16.msra.mxu0 %v2348_v47  ;;  %v2390_v47 = vpack.c.bf16 %v956_v44, %v950_v42  ;;  %v2412_v44 = vpack.c.bf16 %v825_v36, %v819_v35  ;;  %v934_v35 = vld [vmem:[#allocation7 + $0x4c8] sm:$0xff] }
 0x266   : > { %2351 = vmatprep.subr.bf16.mxu0 %v2350_v48  ;;  %v949_v48 = vld [vmem:[#allocation7 + $0x540] sm:$0xff] }
 0x267   : > { %v2392_v50 = vpack.c.bf16 %v955_v49, %v949_v48  ;;  %v837_v48 = vld [vmem:[#allocation7 + $0x1c0] sm:$0xff]  ;;  %v844_v49 = vld [vmem:[#allocation7 + $0x1f8] sm:$0xff] }
 0x269   : > { %2353 = vmatpush1.bf16.msra.mxu0 %v2352_v53  ;;  %v2394_v53 = vpack.c.bf16 %v968_v52, %v962_v51 }
 0x26a   : > { %2355 = vmatprep.subr.bf16.mxu0 %v2354_v54  ;;  %v961_v54 = vld [vmem:[#allocation7 + $0x5a0] sm:$0xff] }
 0x26b   : > { %v2396_v56 = vpack.c.bf16 %v967_v55, %v961_v54  ;;  %v849_v54 = vld [vmem:[#allocation7 + $0x220] sm:$0xff]  ;;  %v856_v55 = vld [vmem:[#allocation7 + $0x258] sm:$0xff] }
 0x26d   : > { %2357 = vmatpush1.bf16.msra.mxu0 %v2356_v59  ;;  %v2398_v59 = vpack.c.bf16 %v790_v58, %v784_v57 }
 0x26e   : > { %2359 = vmatprep.subr.bf16.mxu0 %v2358_v60  ;;  %v766_v60 = vld [vmem:[#allocation5 + $0x8] sm:$0xff] }
 0x271   : > { %2361 = vmatpush1.bf16.msra.mxu0 %v2360_v2  ;;  %v796_v2 = vld [vmem:[#allocation7 + $0x78] sm:$0xff] }
 0x272   : > { %2363 = vmatprep.subr.bf16.mxu0 %v2362_v3  ;;  %v802_v3 = vld [vmem:[#allocation7 + $0xa8] sm:$0xff] }
 0x273   : > { %v2402_v10 = vpack.c.bf16 %v802_v3, %v796_v2  ;;  %v867_v2 = vld [vmem:[#allocation7 + $0x2b0] sm:$0xff]  ;;  %v873_v3 = vld [vmem:[#allocation7 + $0x2e0] sm:$0xff] }
 0x275   : > { %2365 = vmatpush1.bf16.msra.mxu0 %v2364_v8 }
 0x276   : > { %2367 = vmatprep.subr.bf16.mxu0 %v2366_v9  ;;  %v768_v9 = vld [vmem:[#allocation5 + $0x18] sm:$0xff] }
 0x279   : > { %2369 = vmatpush1.bf16.msra.mxu0 %v2368_v14  ;;  %v808_v14 = vld [vmem:[#allocation7 + $0xd8] sm:$0xff] }
 0x27a   : > { %2371 = vmatprep.subr.bf16.mxu0 %v2370_v15  ;;  %v814_v15 = vld [vmem:[#allocation7 + $0x108] sm:$0xff] }
 0x27b   : > { %v2406_v22 = vpack.c.bf16 %v814_v15, %v808_v14 }
 0x27d   : > { %2373 = vmatpush1.bf16.msra.mxu0 %v2372_v20  ;;  %v2404_v20 = vpack.c.bf16 %v801_v12, %v795_v11  ;;  %v885_v11 = vld [vmem:[#allocation7 + $0x340] sm:$0xff]  ;;  %v892_v12 = vld [vmem:[#allocation7 + $0x378] sm:$0xff] }
 0x27e   : > { %2375 = vmatprep.subr.bf16.mxu0 %v2374_v21  ;;  %v770_v21 = vld [vmem:[#allocation5 + $0x28] sm:$0xff] }
 0x281   : > { %2377 = vmatpush1.bf16.msra.mxu0 %v2376_v26  ;;  %v820_v26 = vld [vmem:[#allocation7 + $0x138] sm:$0xff] }
 0x282   : > { %2379 = vmatprep.subr.bf16.mxu0 %v2378_v27  ;;  %v826_v27 = vld [vmem:[#allocation7 + $0x168] sm:$0xff] }
 0x283   : > { %v2410_v34 = vpack.c.bf16 %v826_v27, %v820_v26  ;;  %v916_v26 = vld [vmem:[#allocation7 + $0x438] sm:$0xff]  ;;  %v922_v27 = vld [vmem:[#allocation7 + $0x468] sm:$0xff] }
 0x285   : > { %2381 = vmatpush1.bf16.msra.mxu0 %v2380_v32  ;;  %v2408_v32 = vpack.c.bf16 %v813_v24, %v807_v23  ;;  %v903_v24 = vld [vmem:[#allocation7 + $0x3d0] sm:$0xff] }
 0x286   : > { %2383 = vmatprep.subr.bf16.mxu0 %v2382_v33  ;;  %v772_v33 = vld [vmem:[#allocation5 + $0x38] sm:$0xff] }
 0x289   : > { %2385 = vmatpush1.bf16.msra.mxu0 %v2384_v38  ;;  %v832_v38 = vld [vmem:[#allocation7 + $0x198] sm:$0xff] }
 0x28a   : > { %2387 = vmatprep.subr.bf16.mxu0 %v2386_v39  ;;  %v838_v39 = vld [vmem:[#allocation7 + $0x1c8] sm:$0xff] }
 0x28d   : > { %2389 = vmatpush1.bf16.msra.mxu0 %v2388_v46  ;;  %v2414_v46 = vpack.c.bf16 %v838_v39, %v832_v38  ;;  %v927_v38 = vld [vmem:[#allocation7 + $0x490] sm:$0xff]  ;;  %v933_v39 = vld [vmem:[#allocation7 + $0x4c0] sm:$0xff] }
 0x28e   : > { %2391 = vmatprep.subr.bf16.mxu0 %v2390_v47  ;;  %v831_v47 = vld [vmem:[#allocation7 + $0x190] sm:$0xff] }
 0x28f   : > { %v2416_v51 = vpack.c.bf16 %v837_v48, %v831_v47  ;;  %v939_v48 = vld [vmem:[#allocation7 + $0x4f0] sm:$0xff] }
 0x291   : > { %2393 = vmatpush1.bf16.msra.mxu0 %v2392_v50  ;;  %v850_v50 = vld [vmem:[#allocation7 + $0x228] sm:$0xff] }
 0x292   : > { %2395 = vmatprep.subr.bf16.mxu0 %v2394_v53  ;;  %v2418_v52 = vpack.c.bf16 %v850_v50, %v844_v49  ;;  %v843_v53 = vld [vmem:[#allocation7 + $0x1f0] sm:$0xff]  ;;  %v945_v49 = vld [vmem:[#allocation7 + $0x520] sm:$0xff]  ;;  %v952_v50 = vld [vmem:[#allocation7 + $0x558] sm:$0xff] }
 0x293   : > { %v2420_v57 = vpack.c.bf16 %v849_v54, %v843_v53  ;;  %v951_v54 = vld [vmem:[#allocation7 + $0x550] sm:$0xff] }
 0x295   : > { %2397 = vmatpush1.bf16.msra.mxu0 %v2396_v56  ;;  %v862_v56 = vld [vmem:[#allocation7 + $0x288] sm:$0xff] }
 0x296   : > { %2399 = vmatprep.subr.bf16.mxu0 %v2398_v59  ;;  %v2422_v58 = vpack.c.bf16 %v862_v56, %v856_v55  ;;  %v855_v59 = vld [vmem:[#allocation7 + $0x250] sm:$0xff]  ;;  %v957_v55 = vld [vmem:[#allocation7 + $0x580] sm:$0xff]  ;;  %v964_v56 = vld [vmem:[#allocation7 + $0x5b8] sm:$0xff] }
 0x32b   : > { %v742_v63 = vpop.f32.mrb[2].mxu0 }
 0x32c   : > { %v744_v4 = vpop.f32.mrb[3].mxu0  ;;  %v3347_v8 = vmul.f32 %v765_v1, %v742_v63  ;;  %v2426_v1 = vpack.c.bf16 %v874_v62, %v868_v61  ;;  %v969_v61 = vld [vmem:[#allocation7 + $0x5e0] sm:$0xff]  ;;  %v786_v62 = vld [vmem:[#allocation7 + $0x28] sm:$0xff] }
 0x32d   : > { %v3345_v5 = vmul.f32 %v766_v60, %v744_v4  ;;  %v861_v60 = vld [vmem:[#allocation7 + $0x280] sm:$0xff]  ;;  %v880_v4 = vld [vmem:[#allocation7 + $0x318] sm:$0xff] }
 0x32e   : > { %v2424_v63 = vpack.c.bf16 %v861_v60, %v855_v59  ;;  %v963_v60 = vld [vmem:[#allocation7 + $0x5b0] sm:$0xff] }
 0x32f   : > { %v748_v13 = vpop.f32.mrb[4].mxu0  ;;  %1037 = vmatprep.mubr.f32.mxu0 %v3345_v5 }
 0x330   : > { %v3350_v16 = vmul.f32 %v767_v6, %v748_v13  ;;  %v750_v17 = vpop.f32.mrb[5].mxu0  ;;  %1038 = vmatmul.mubr.f32.vlgmr.msra.gmra.mrb[10].mxu0 %v3347_v8  ;;  %v886_v6 = vld [vmem:[#allocation7 + $0x348] sm:$0xff] }
 0x331   : > { %v3353_v18 = vmul.f32 %v768_v9, %v750_v17  ;;  %2401 = vmatpush1.bf16.msra.mxu0 %v2400_v7  ;;  %v2428_v7 = vpack.c.bf16 %v873_v3, %v867_v2  ;;  %v2430_v9 = vpack.c.bf16 %v886_v6, %v880_v4  ;;  %v898_v13 = vld [vmem:[#allocation7 + $0x3a8] sm:$0xff]  ;;  %v891_v17 = vld [vmem:[#allocation7 + $0x370] sm:$0xff]  ;;  %v785_v3 = vld [vmem:[#allocation7 + $0x20] sm:$0xff] }
 0x332   : > { %2403 = vmatprep.subr.bf16.mxu0 %v2402_v10  ;;  %v879_v10 = vld [vmem:[#allocation7 + $0x310] sm:$0xff]  ;;  %v2434_v15 = vpack.c.bf16 %v898_v13, %v892_v12  ;;  %v798_v6 = vld [vmem:[#allocation7 + $0x88] sm:$0xff] }
 0x333   : > { %v754_v25 = vpop.f32.mrb[6].mxu0  ;;  %1043 = vmatprep.mubr.f32.mxu0 %v3353_v18  ;;  %v2432_v14 = vpack.c.bf16 %v885_v11, %v879_v10  ;;  %v791_v4 = vld [vmem:[#allocation7 + $0x50] sm:$0xff]  ;;  %v797_v11 = vld [vmem:[#allocation7 + $0x80] sm:$0xff]  ;;  %v810_v13 = vld [vmem:[#allocation7 + $0xe8] sm:$0xff] }
 0x334   : > { %v3356_v28 = vmul.f32 %v769_v19, %v754_v25  ;;  %v756_v29 = vpop.f32.mrb[7].mxu0  ;;  %1044 = vmatmul.mubr.f32.gmra.mrb[12].mxu0 %v3350_v16  ;;  %v897_v19 = vld [vmem:[#allocation7 + $0x3a0] sm:$0xff]  ;;  %v803_v12 = vld [vmem:[#allocation7 + $0xb0] sm:$0xff] }
 0x335   : > { %v3359_v30 = vmul.f32 %v770_v21, %v756_v29  ;;  %2405 = vmatpush1.bf16.msra.mxu0 %v2404_v20  ;;  %v904_v20 = vld [vmem:[#allocation7 + $0x3d8] sm:$0xff]  ;;  %v910_v21 = vld [vmem:[#allocation7 + $0x408] sm:$0xff]  ;;  %v909_v25 = vld [vmem:[#allocation7 + $0x400] sm:$0xff] }
 0x336   : > { %2407 = vmatprep.subr.bf16.mxu0 %v2406_v22  ;;  %v2436_v22 = vpack.c.bf16 %v897_v19, %v891_v17  ;;  %v2438_v23 = vpack.c.bf16 %v910_v21, %v904_v20  ;;  %v2440_v29 = vpack.c.bf16 %v909_v25, %v903_v24  ;;  %v809_v19 = vld [vmem:[#allocation7 + $0xe0] sm:$0xff]  ;;  %v815_v20 = vld [vmem:[#allocation7 + $0x110] sm:$0xff]  ;;  %v822_v21 = vld [vmem:[#allocation7 + $0x148] sm:$0xff] }
 0x337   : > { %v760_v37 = vpop.f32.mrb[8].mxu0  ;;  %1049 = vmatprep.mubr.f32.mxu0 %v3359_v30  ;;  %v821_v25 = vld [vmem:[#allocation7 + $0x140] sm:$0xff] }
 0x338   : > { %v3362_v40 = vmul.f32 %v771_v31, %v760_v37  ;;  %v762_v41 = vpop.f32.mrb[9].mxu0  ;;  %1050 = vmatmul.mubr.f32.gmra.mrb[14].mxu0 %v3356_v28  ;;  %v2442_v31 = vpack.c.bf16 %v922_v27, %v916_v26  ;;  %v827_v26 = vld [vmem:[#allocation7 + $0x170] sm:$0xff]  ;;  %v834_v27 = vld [vmem:[#allocation7 + $0x1a8] sm:$0xff] }
 0x339   : > { %v3365_v42 = vmul.f32 %v772_v33, %v762_v41  ;;  %2409 = vmatpush1.bf16.msra.mxu0 %v2408_v32  ;;  %v915_v32 = vld [vmem:[#allocation7 + $0x430] sm:$0xff]  ;;  %v921_v33 = vld [vmem:[#allocation7 + $0x460] sm:$0xff]  ;;  %v940_v41 = vld [vmem:[#allocation7 + $0x4f8] sm:$0xff] }
 0x33a   : > { %2411 = vmatprep.subr.bf16.mxu0 %v2410_v34  ;;  %v928_v34 = vld [vmem:[#allocation7 + $0x498] sm:$0xff]  ;;  %v2444_v36 = vpack.c.bf16 %v921_v33, %v915_v32  ;;  %v833_v33 = vld [vmem:[#allocation7 + $0x1a0] sm:$0xff] }
 0x33b   : > { %1055 = vmatprep.mubr.f32.mxu0 %v3365_v42  ;;  %v2446_v37 = vpack.c.bf16 %v934_v35, %v928_v34  ;;  %v839_v34 = vld [vmem:[#allocation7 + $0x1d0] sm:$0xff]  ;;  %v846_v35 = vld [vmem:[#allocation7 + $0x208] sm:$0xff] }
 0x33c   : > { %1056 = vmatmul.mubr.f32.gmra.mrb[16].mxu0 %v3362_v40 }
 0x33d   : > { %2413 = vmatpush1.bf16.msra.mxu0 %v2412_v44  ;;  %1126 = vmatprep.mubr.f32.mxu0 %v3345_v5  ;;  %v946_v44 = vld [vmem:[#allocation7 + $0x528] sm:$0xff] }
 0x33e   : > { %2415 = vmatprep.subr.bf16.mxu0 %v2414_v46  ;;  %v2448_v46 = vpack.c.bf16 %v933_v39, %v927_v38  ;;  %v2450_v47 = vpack.c.bf16 %v946_v44, %v940_v41  ;;  %v845_v39 = vld [vmem:[#allocation7 + $0x200] sm:$0xff]  ;;  %v851_v41 = vld [vmem:[#allocation7 + $0x230] sm:$0xff]  ;;  %v858_v44 = vld [vmem:[#allocation7 + $0x268] sm:$0xff] }
 0x341   : > { %2417 = vmatpush1.bf16.msra.mxu0 %v2416_v51  ;;  %v958_v51 = vld [vmem:[#allocation7 + $0x588] sm:$0xff] }
 0x342   : > { %2419 = vmatprep.subr.bf16.mxu0 %v2418_v52  ;;  %v2452_v52 = vpack.c.bf16 %v945_v49, %v939_v48  ;;  %v2454_v53 = vpack.c.bf16 %v958_v51, %v952_v50  ;;  %v857_v49 = vld [vmem:[#allocation7 + $0x260] sm:$0xff]  ;;  %v863_v50 = vld [vmem:[#allocation7 + $0x290] sm:$0xff]  ;;  %v870_v51 = vld [vmem:[#allocation7 + $0x2c8] sm:$0xff] }
 0x345   : > { %2421 = vmatpush1.bf16.msra.mxu0 %v2420_v57  ;;  %v970_v57 = vld [vmem:[#allocation7 + $0x5e8] sm:$0xff] }
 0x346   : > { %2423 = vmatprep.subr.bf16.mxu0 %v2422_v58  ;;  %v2456_v58 = vpack.c.bf16 %v957_v55, %v951_v54  ;;  %v2458_v59 = vpack.c.bf16 %v970_v57, %v964_v56  ;;  %v875_v55 = vld [vmem:[#allocation7 + $0x2f0] sm:$0xff]  ;;  %v882_v56 = vld [vmem:[#allocation7 + $0x328] sm:$0xff]  ;;  %v888_v57 = vld [vmem:[#allocation7 + $0x358] sm:$0xff] }
 0x349   : > { %2425 = vmatpush1.bf16.msra.mxu0 %v2424_v63  ;;  %v792_v63 = vld [vmem:[#allocation7 + $0x58] sm:$0xff] }
 0x34a   : > { %2427 = vmatprep.subr.bf16.mxu0 %v2426_v1  ;;  %v2460_v1 = vpack.c.bf16 %v969_v61, %v963_v60  ;;  %v2462_v2 = vpack.c.bf16 %v792_v63, %v786_v62  ;;  %v881_v60 = vld [vmem:[#allocation7 + $0x320] sm:$0xff]  ;;  %v887_v61 = vld [vmem:[#allocation7 + $0x350] sm:$0xff]  ;;  %v894_v62 = vld [vmem:[#allocation7 + $0x388] sm:$0xff] }
 0x34b   : > { %v900_v63 = vld [vmem:[#allocation7 + $0x3b8] sm:$0xff] }
 0x34d   : > { %2429 = vmatpush1.bf16.msra.mxu0 %v2428_v7  ;;  %v804_v7 = vld [vmem:[#allocation7 + $0xb8] sm:$0xff] }
 0x34e   : > { %2431 = vmatprep.subr.bf16.mxu0 %v2430_v9  ;;  %v2464_v9 = vpack.c.bf16 %v791_v4, %v785_v3  ;;  %v2466_v10 = vpack.c.bf16 %v804_v7, %v798_v6  ;;  %v893_v3 = vld [vmem:[#allocation7 + $0x380] sm:$0xff]  ;;  %v899_v4 = vld [vmem:[#allocation7 + $0x3b0] sm:$0xff]  ;;  %v906_v6 = vld [vmem:[#allocation7 + $0x3e8] sm:$0xff] }
 0x34f   : > { %v912_v7 = vld [vmem:[#allocation7 + $0x418] sm:$0xff] }
 0x351   : > { %2433 = vmatpush1.bf16.msra.mxu0 %v2432_v14  ;;  %v816_v14 = vld [vmem:[#allocation7 + $0x118] sm:$0xff] }
 0x352   : > { %2435 = vmatprep.subr.bf16.mxu0 %v2434_v15  ;;  %v2468_v15 = vpack.c.bf16 %v803_v12, %v797_v11  ;;  %v2470_v17 = vpack.c.bf16 %v816_v14, %v810_v13  ;;  %v905_v11 = vld [vmem:[#allocation7 + $0x3e0] sm:$0xff]  ;;  %v911_v12 = vld [vmem:[#allocation7 + $0x410] sm:$0xff]  ;;  %v918_v13 = vld [vmem:[#allocation7 + $0x448] sm:$0xff] }
 0x353   : > { %v924_v14 = vld [vmem:[#allocation7 + $0x478] sm:$0xff] }
 0x355   : > { %2437 = vmatpush1.bf16.msra.mxu0 %v2436_v22  ;;  %v828_v22 = vld [vmem:[#allocation7 + $0x178] sm:$0xff] }
 0x356   : > { %2439 = vmatprep.subr.bf16.mxu0 %v2438_v23  ;;  %v2472_v23 = vpack.c.bf16 %v815_v20, %v809_v19  ;;  %v2474_v24 = vpack.c.bf16 %v828_v22, %v822_v21  ;;  %v917_v19 = vld [vmem:[#allocation7 + $0x440] sm:$0xff]  ;;  %v923_v20 = vld [vmem:[#allocation7 + $0x470] sm:$0xff]  ;;  %v930_v21 = vld [vmem:[#allocation7 + $0x4a8] sm:$0xff] }
 0x357   : > { %v936_v22 = vld [vmem:[#allocation7 + $0x4d8] sm:$0xff] }
 0x359   : > { %2441 = vmatpush1.bf16.msra.mxu0 %v2440_v29  ;;  %v840_v29 = vld [vmem:[#allocation7 + $0x1d8] sm:$0xff] }
 0x35a   : > { %2443 = vmatprep.subr.bf16.mxu0 %v2442_v31  ;;  %v2476_v31 = vpack.c.bf16 %v827_v26, %v821_v25  ;;  %v2478_v32 = vpack.c.bf16 %v840_v29, %v834_v27  ;;  %v929_v25 = vld [vmem:[#allocation7 + $0x4a0] sm:$0xff]  ;;  %v935_v26 = vld [vmem:[#allocation7 + $0x4d0] sm:$0xff]  ;;  %v942_v27 = vld [vmem:[#allocation7 + $0x508] sm:$0xff] }
 0x35b   : > { %v948_v29 = vld [vmem:[#allocation7 + $0x538] sm:$0xff] }
 0x35d   : > { %2445 = vmatpush1.bf16.msra.mxu0 %v2444_v36  ;;  %v852_v36 = vld [vmem:[#allocation7 + $0x238] sm:$0xff] }
 0x35e   : > { %2447 = vmatprep.subr.bf16.mxu0 %v2446_v37  ;;  %v2480_v37 = vpack.c.bf16 %v839_v34, %v833_v33  ;;  %v2482_v38 = vpack.c.bf16 %v852_v36, %v846_v35  ;;  %v941_v33 = vld [vmem:[#allocation7 + $0x500] sm:$0xff]  ;;  %v947_v34 = vld [vmem:[#allocation7 + $0x530] sm:$0xff]  ;;  %v954_v35 = vld [vmem:[#allocation7 + $0x568] sm:$0xff] }
 0x35f   : > { %v960_v36 = vld [vmem:[#allocation7 + $0x598] sm:$0xff] }
 0x361   : > { %2449 = vmatpush1.bf16.msra.mxu0 %v2448_v46  ;;  %v864_v46 = vld [vmem:[#allocation7 + $0x298] sm:$0xff] }
 0x362   : > { %2451 = vmatprep.subr.bf16.mxu0 %v2450_v47  ;;  %v2484_v47 = vpack.c.bf16 %v851_v41, %v845_v39  ;;  %v2486_v48 = vpack.c.bf16 %v864_v46, %v858_v44  ;;  %v953_v39 = vld [vmem:[#allocation7 + $0x560] sm:$0xff]  ;;  %v959_v41 = vld [vmem:[#allocation7 + $0x590] sm:$0xff]  ;;  %v966_v44 = vld [vmem:[#allocation7 + $0x5c8] sm:$0xff] }
 0x363   : > { %v972_v46 = vld [vmem:[#allocation7 + $0x5f8] sm:$0xff] }
 0x365   : > { %2453 = vmatpush1.bf16.msra.mxu0 %v2452_v52  ;;  %v876_v52 = vld [vmem:[#allocation7 + $0x2f8] sm:$0xff] }
 0x366   : > { %2455 = vmatprep.subr.bf16.mxu0 %v2454_v53  ;;  %v2488_v53 = vpack.c.bf16 %v863_v50, %v857_v49  ;;  %v2490_v54 = vpack.c.bf16 %v876_v52, %v870_v51  ;;  %v965_v49 = vld [vmem:[#allocation7 + $0x5c0] sm:$0xff]  ;;  %v971_v50 = vld [vmem:[#allocation7 + $0x5f0] sm:$0xff] }
 0x367   : > { %v2524_v51 = vpack.c.bf16 %v971_v50, %v965_v49  ;;  %v2207_v49 = vld [vmem:[%s3762_s8 + $0xe8] sm:$0xff] }
 0x369   : > { %2457 = vmatpush1.bf16.msra.mxu0 %v2456_v58 }
 0x36a   : > { %2459 = vmatprep.subr.bf16.mxu0 %v2458_v59  ;;  %v2494_v59 = vpack.c.bf16 %v888_v57, %v882_v56  ;;  %v1241_v57 = vld [vmem:[%s3762_s8] sm:$0xff] }
 0x36d   : > { %2461 = vmatpush1.bf16.msra.mxu0 %v2460_v1  ;;  %v2496_v1 = vpack.c.bf16 %v887_v61, %v881_v60  ;;  %v1249_v60 = vld [vmem:[%s3762_s8 + $0x40] sm:$0xff]  ;;  %v1243_v61 = vld [vmem:[%s3762_s8 + $0x10] sm:$0xff] }
 0x36e   : > { %2463 = vmatprep.subr.bf16.mxu0 %v2462_v2  ;;  %v2498_v2 = vpack.c.bf16 %v900_v63, %v894_v62  ;;  %v1250_v62 = vld [vmem:[%s3762_s8 + $0x48] sm:$0xff]  ;;  %v1244_v63 = vld [vmem:[%s3762_s8 + $0x18] sm:$0xff] }
 0x370   : > { %1127 = vmatmul.mubr.f32.vlgmr.msra.gmra.mrb[18].mxu0 %v3347_v8 }
 0x371   : > { %1132 = vmatprep.mubr.f32.mxu0 %v3353_v18  ;;  %2465 = vmatpush1.bf16.msra.mxu0 %v2464_v9  ;;  %v2500_v9 = vpack.c.bf16 %v899_v4, %v893_v3  ;;  %v1252_v3 = vld [vmem:[%s3762_s8 + $0x58] sm:$0xff]  ;;  %v1246_v4 = vld [vmem:[%s3762_s8 + $0x28] sm:$0xff] }
 0x372   : > { %2467 = vmatprep.subr.bf16.mxu0 %v2466_v10  ;;  %v2502_v10 = vpack.c.bf16 %v912_v7, %v906_v6  ;;  %v1253_v6 = vld [vmem:[%s3762_s8 + $0x60] sm:$0xff]  ;;  %v1254_v7 = vld [vmem:[%s3762_s8 + $0x68] sm:$0xff] }
 0x374   : > { %1133 = vmatmul.mubr.f32.gmra.mrb[20].mxu0 %v3350_v16 }
 0x375   : > { %1138 = vmatprep.mubr.f32.mxu0 %v3359_v30  ;;  %2469 = vmatpush1.bf16.msra.mxu0 %v2468_v15  ;;  %v2504_v15 = vpack.c.bf16 %v911_v12, %v905_v11 }
 0x376   : > { %2471 = vmatprep.subr.bf16.mxu0 %v2470_v17  ;;  %v2506_v17 = vpack.c.bf16 %v924_v14, %v918_v13 }
 0x378   : > { %1139 = vmatmul.mubr.f32.gmra.mrb[22].mxu0 %v3356_v28 }
 0x379   : > { %1144 = vmatprep.mubr.f32.mxu0 %v3365_v42  ;;  %2473 = vmatpush1.bf16.msra.mxu0 %v2472_v23  ;;  %v2508_v23 = vpack.c.bf16 %v923_v20, %v917_v19 }
 0x37a   : > { %2475 = vmatprep.subr.bf16.mxu0 %v2474_v24  ;;  %v2510_v24 = vpack.c.bf16 %v936_v22, %v930_v21 }
 0x37c   : > { %1145 = vmatmul.mubr.f32.gmra.mrb[24].mxu0 %v3362_v40 }
 0x37d   : > { %2477 = vmatpush1.bf16.msra.mxu0 %v2476_v31  ;;  %1215 = vmatprep.mubr.f32.mxu0 %v3345_v5  ;;  %v869_v5 = vld [vmem:[#allocation7 + $0x2c0] sm:$0xff]  ;;  %v2512_v31 = vpack.c.bf16 %v935_v26, %v929_v25  ;;  %v2195_v26 = vld [vmem:[%s3762_s8 + $0x88] sm:$0xff] }
 0x37e   : > { %2479 = vmatprep.subr.bf16.mxu0 %v2478_v32  ;;  %v2492_v58 = vpack.c.bf16 %v875_v55, %v869_v5  ;;  %v2514_v32 = vpack.c.bf16 %v948_v29, %v942_v27  ;;  %v2194_v25 = vld [vmem:[%s3762_s8 + $0x80] sm:$0xff]  ;;  %v2196_v27 = vld [vmem:[%s3762_s8 + $0x90] sm:$0xff]  ;;  %v2197_v29 = vld [vmem:[%s3762_s8 + $0x98] sm:$0xff] }
 0x381   : > { %2481 = vmatpush1.bf16.msra.mxu0 %v2480_v37  ;;  %v2516_v37 = vpack.c.bf16 %v947_v34, %v941_v33  ;;  %v2200_v33 = vld [vmem:[%s3762_s8 + $0xb0] sm:$0xff]  ;;  %v2201_v34 = vld [vmem:[%s3762_s8 + $0xb8] sm:$0xff] }
 0x382   : > { %2483 = vmatprep.subr.bf16.mxu0 %v2482_v38  ;;  %v2518_v38 = vpack.c.bf16 %v960_v36, %v954_v35  ;;  %v2202_v35 = vld [vmem:[%s3762_s8 + $0xc0] sm:$0xff]  ;;  %v2203_v36 = vld [vmem:[%s3762_s8 + $0xc8] sm:$0xff] }
 0x385   : > { %2485 = vmatpush1.bf16.msra.mxu0 %v2484_v47  ;;  %v2520_v47 = vpack.c.bf16 %v959_v41, %v953_v39 }
 0x386   : > { %2487 = vmatprep.subr.bf16.mxu0 %v2486_v48  ;;  %v2522_v48 = vpack.c.bf16 %v972_v46, %v966_v44  ;;  %v2206_v44 = vld [vmem:[%s3762_s8 + $0xe0] sm:$0xff] }
 0x389   : > { %2489 = vmatpush1.bf16.msra.mxu0 %v2488_v53 }
 0x38a   : > { %2491 = vmatprep.subr.bf16.mxu0 %v2490_v54 }
 0x38d   : > { %2493 = vmatpush1.bf16.msra.mxu0 %v2492_v58  ;;  %v1248_v58 = vld [vmem:[%s3762_s8 + $0x38] sm:$0xff] }
 0x38e   : > { %2495 = vmatprep.subr.bf16.mxu0 %v2494_v59  ;;  %v1242_v59 = vld [vmem:[%s3762_s8 + $0x8] sm:$0xff] }
 0x391   : > { %2497 = vmatpush1.bf16.msra.mxu0 %v2496_v1  ;;  %v1251_v1 = vld [vmem:[%s3762_s8 + $0x50] sm:$0xff] }
 0x392   : > { %2499 = vmatprep.subr.bf16.mxu0 %v2498_v2  ;;  %v1245_v2 = vld [vmem:[%s3762_s8 + $0x20] sm:$0xff] }
 0x395   : > { %2501 = vmatpush1.bf16.msra.mxu0 %v2500_v9  ;;  %v1255_v9 = vld [vmem:[%s3762_s8 + $0x70] sm:$0xff] }
 0x396   : > { %2503 = vmatprep.subr.bf16.mxu0 %v2502_v10  ;;  %v1256_v10 = vld [vmem:[%s3762_s8 + $0x78] sm:$0xff] }
 0x399   : > { %2505 = vmatpush1.bf16.msra.mxu0 %v2504_v15 }
 0x39a   : > { %2507 = vmatprep.subr.bf16.mxu0 %v2506_v17 }
 0x39d   : > { %2509 = vmatpush1.bf16.msra.mxu0 %v2508_v23 }
 0x39e   : > { %2511 = vmatprep.subr.bf16.mxu0 %v2510_v24 }
 0x3a1   : > { %2513 = vmatpush1.bf16.msra.mxu0 %v2512_v31  ;;  %v2198_v31 = vld [vmem:[%s3762_s8 + $0xa0] sm:$0xff] }
 0x3a2   : > { %2515 = vmatprep.subr.bf16.mxu0 %v2514_v32  ;;  %v2199_v32 = vld [vmem:[%s3762_s8 + $0xa8] sm:$0xff] }
 0x3a5   : > { %2517 = vmatpush1.bf16.msra.mxu0 %v2516_v37  ;;  %v2204_v37 = vld [vmem:[%s3762_s8 + $0xd0] sm:$0xff] }
 0x3a6   : > { %2519 = vmatprep.subr.bf16.mxu0 %v2518_v38  ;;  %v2205_v38 = vld [vmem:[%s3762_s8 + $0xd8] sm:$0xff] }
 0x3a9   : > { %2521 = vmatpush1.bf16.msra.mxu0 %v2520_v47 }
 0x3aa   : > { %2523 = vmatprep.subr.bf16.mxu0 %v2522_v48 }
 0x3ad   : > { %2525 = vmatpush1.bf16.msra.mxu0 %v2524_v51 }
 0x3b0   : > { %1216 = vmatmul.mubr.f32.vlgmr.msra.gmra.mrb[26].mxu0 %v3347_v8 }
 0x3b1   : > { %1221 = vmatprep.mubr.f32.mxu0 %v3353_v18 }
 0x3b4   : > { %1222 = vmatmul.mubr.f32.gmra.mrb[28].mxu0 %v3350_v16 }
 0x3b5   : > { %1227 = vmatprep.mubr.f32.mxu0 %v3359_v30 }
 0x3b8   : > { %1228 = vmatmul.mubr.f32.gmra.mrb[30].mxu0 %v3356_v28 }
 0x3b9   : > { %1233 = vmatprep.mubr.f32.mxu0 %v3365_v42 }
 0x3bc   : > { %1234 = vmatmul.mubr.f32.gmra.mrb[32].mxu0 %v3362_v40  ;;  %v1247_v40 = vld [vmem:[%s3762_s8 + $0x30] sm:$0xff] }
 0x3bd   : > { %1370 = vmatprep.mubr.f32.mxu0 %v2906_v0 }
 0x403   : > { %v1039_v52 = vpop.f32.mrb[10].mxu0 }
 0x404   : > { %v1041_v53 = vpop.f32.mrb[11].mxu0 }
 0x407   : > { %v1045_v54 = vpop.f32.mrb[12].mxu0 }
 0x408   : > { %v2528_v5 = vpack.c.bf16 %v1045_v54, %v1039_v52  ;;  %v1047_v55 = vpop.f32.mrb[13].mxu0 }
 0x409   : > { %v2526_v8 = vpack.c.bf16 %v1047_v55, %v1041_v53  ;;  %v2208_v53 = vld [vmem:[%s3762_s8 + $0xf0] sm:$0xff] }
 0x40b   : > { %2527 = vmatprep.subr.bf16.mxu0 %v2526_v8  ;;  %2550 = vmatprep.subr.bf16.mxu1 %v2526_v8  ;;  %v1051_v18 = vpop.f32.mrb[14].mxu0  ;;  %v2209_v8 = vld [vmem:[%s3762_s8 + $0xf8] sm:$0xff] }
 0x40c   : > { %2529 = vmatpush1.bf16.msra.mxu0 %v2528_v5  ;;  %2552 = vmatpush1.bf16.msra.mxu1 %v2528_v5  ;;  %v1053_v16 = vpop.f32.mrb[15].mxu0 }
 0x40f   : > { %v1057_v30 = vpop.f32.mrb[16].mxu0 }
 0x410   : > { %v2532_v28 = vpack.c.bf16 %v1057_v30, %v1051_v18  ;;  %v1059_v56 = vpop.f32.mrb[17].mxu0  ;;  %v2227_v30 = vld [vmem:[%s3762_s8 + $0x108] sm:$0xff] }
 0x411   : > { %v2530_v42 = vpack.c.bf16 %v1059_v56, %v1053_v16  ;;  %v2226_v16 = vld [vmem:[%s3762_s8 + $0x100] sm:$0xff]  ;;  %v2229_v56 = vld [vmem:[%s3762_s8 + $0x118] sm:$0xff] }
 0x413   : > { %2551 = vmatprep.subr.bf16.mxu1 %v2530_v42  ;;  %2531 = vmatprep.subr.bf16.mxu0 %v2530_v42  ;;  %v2230_v42 = vld [vmem:[%s3762_s8 + $0x120] sm:$0xff] }
 0x414   : > { %2553 = vmatpush1.bf16.msra.mxu1 %v2532_v28  ;;  %2533 = vmatpush1.bf16.msra.mxu0 %v2532_v28  ;;  %v2228_v28 = vld [vmem:[%s3762_s8 + $0x110] sm:$0xff] }
 0x417   : > { %2184 = vmatmul.mubr.msk.f32.vlgmr.msra.gmra.mrb[2].mxu1 %vm1257_vm3, %v1247_v40  ;;  %2178 = vmatmul.mubr.msk.f32.vlgmr.msra.gmra.mrb[34].mxu0 %vm1257_vm3, %v1241_v57  ;;  %v2231_v40 = vld [vmem:[%s3762_s8 + $0x128] sm:$0xff]  ;;  %v2232_v57 = vld [vmem:[%s3762_s8 + $0x130] sm:$0xff] }
 0x418   : > { %1412 = vmatprep.mubr.f32.mxu1 %v2906_v0  ;;  %1376 = vmatprep.mubr.f32.mxu0 %v2906_v0 }
 0x41b   : > { %2185 = vmatmul.mubr.msk.f32.gmra.mrb[4].mxu1 %vm1257_vm3, %v1248_v58  ;;  %2179 = vmatmul.mubr.msk.f32.gmra.mrb[36].mxu0 %vm1257_vm3, %v1242_v59  ;;  %v2233_v58 = vld [vmem:[%s3762_s8 + $0x138] sm:$0xff]  ;;  %v2234_v59 = vld [vmem:[%s3762_s8 + $0x140] sm:$0xff] }
 0x41c   : > { %1418 = vmatprep.mubr.f32.mxu1 %v2906_v0  ;;  %1382 = vmatprep.mubr.f32.mxu0 %v2906_v0 }
 0x41f   : > { %2186 = vmatmul.mubr.msk.f32.gmra.mrb[6].mxu1 %vm1257_vm3, %v1249_v60  ;;  %2180 = vmatmul.mubr.msk.f32.gmra.mrb[38].mxu0 %vm1257_vm3, %v1243_v61  ;;  %v2235_v60 = vld [vmem:[%s3762_s8 + $0x148] sm:$0xff]  ;;  %v2236_v61 = vld [vmem:[%s3762_s8 + $0x150] sm:$0xff] }
 0x420   : > { %1424 = vmatprep.mubr.f32.mxu1 %v2906_v0  ;;  %1388 = vmatprep.mubr.f32.mxu0 %v2906_v0 }
 0x423   : > { %2187 = vmatmul.mubr.msk.f32.gmra.mrb[8].mxu1 %vm1257_vm3, %v1250_v62  ;;  %2181 = vmatmul.mubr.msk.f32.gmra.mrb[40].mxu0 %vm1257_vm3, %v1244_v63  ;;  %v2237_v62 = vld [vmem:[%s3762_s8 + $0x158] sm:$0xff]  ;;  %v2238_v63 = vld [vmem:[%s3762_s8 + $0x160] sm:$0xff] }
 0x424   : > { %1430 = vmatprep.mubr.f32.mxu1 %v2906_v0  ;;  %1394 = vmatprep.mubr.f32.mxu0 %v2906_v0 }
 0x427   : > { %2188 = vmatmul.mubr.msk.f32.gmra.mrb[10].mxu1 %vm1257_vm3, %v1251_v1  ;;  %2182 = vmatmul.mubr.msk.f32.gmra.mrb[42].mxu0 %vm1257_vm3, %v1245_v2  ;;  %v2239_v1 = vld [vmem:[%s3762_s8 + $0x168] sm:$0xff]  ;;  %v2240_v2 = vld [vmem:[%s3762_s8 + $0x170] sm:$0xff] }
 0x428   : > { %1436 = vmatprep.mubr.f32.mxu1 %v2906_v0  ;;  %1400 = vmatprep.mubr.f32.mxu0 %v2906_v0 }
 0x42b   : > { %2189 = vmatmul.mubr.msk.f32.gmra.mrb[12].mxu1 %vm1257_vm3, %v1252_v3  ;;  %2183 = vmatmul.mubr.msk.f32.gmra.mrb[44].mxu0 %vm1257_vm3, %v1246_v4  ;;  %v2241_v3 = vld [vmem:[%s3762_s8 + $0x178] sm:$0xff] }
 0x42c   : > { %1442 = vmatprep.mubr.f32.mxu1 %v2906_v0 }
 0x42f   : > { %2190 = vmatmul.mubr.msk.f32.gmra.mrb[14].mxu1 %vm1257_vm3, %v1253_v6 }
 0x430   : > { %1448 = vmatprep.mubr.f32.mxu1 %v2906_v0 }
 0x433   : > { %2191 = vmatmul.mubr.msk.f32.gmra.mrb[16].mxu1 %vm1257_vm3, %v1254_v7 }
 0x434   : > { %1454 = vmatprep.mubr.f32.mxu1 %v2906_v0 }
 0x437   : > { %2192 = vmatmul.mubr.msk.f32.gmra.mrb[18].mxu1 %vm1257_vm3, %v1255_v9 }
 0x438   : > { %1460 = vmatprep.mubr.f32.mxu1 %v2906_v0 }
 0x43b   : > { %2193 = vmatmul.mubr.msk.f32.gmra.mrb[20].mxu1 %vm1257_vm3, %v1256_v10 }
 0x43c   : > { %1639 = vmatprep.mubr.f32.mxu1 %v2906_v0 }
 0x443   : > { %v1128_v11 = vpop.f32.mrb[18].mxu0 }
 0x444   : > { %v1130_v12 = vpop.f32.mrb[19].mxu0 }
 0x447   : > { %v1134_v13 = vpop.f32.mrb[20].mxu0 }
 0x448   : > { %v2536_v14 = vpack.c.bf16 %v1134_v13, %v1128_v11  ;;  %v1136_v15 = vpop.f32.mrb[21].mxu0 }
 0x449   : > { %v2534_v17 = vpack.c.bf16 %v1136_v15, %v1130_v12 }
 0x44b   : > { %v1140_v19 = vpop.f32.mrb[22].mxu0  ;;  %2535 = vmatprep.subr.bf16.mxu1 %v2534_v17 }
 0x44c   : > { %v1142_v20 = vpop.f32.mrb[23].mxu0  ;;  %2537 = vmatpush1.bf16.msra.mxu1 %v2536_v14 }
 0x44f   : > { %v1146_v21 = vpop.f32.mrb[24].mxu0 }
 0x450   : > { %v2540_v22 = vpack.c.bf16 %v1146_v21, %v1140_v19  ;;  %v1148_v23 = vpop.f32.mrb[25].mxu0  ;;  %v1240_v19 = vld [vmem:[%s3763_s9] sm:$0x3] }
 0x451   : > { %v2538_v24 = vpack.c.bf16 %v1148_v23, %v1142_v20  ;;  %v3628_v20 = vrot.slane %v1240_v19, %v3311_v43  ;;  %v3631_v21 = vrot.slane %v1240_v19, %v3316_v45 }
 0x453   : > { %2539 = vmatprep.subr.bf16.mxu1 %v2538_v24 }
 0x454   : > { %2541 = vmatpush1.bf16.msra.mxu1 %v2540_v22 }
 0x457   : > { %2210 = vmatmul.mubr.msk.f32.vlgmr.msra.gmra.mrb[22].mxu1 %vm1257_vm3, %v2194_v25 }
 0x458   : > { %1645 = vmatprep.mubr.f32.mxu1 %v2906_v0 }
 0x45b   : > { %2211 = vmatmul.mubr.msk.f32.gmra.mrb[24].mxu1 %vm1257_vm3, %v2195_v26 }
 0x45c   : > { %1651 = vmatprep.mubr.f32.mxu1 %v2906_v0 }
 0x45f   : > { %2212 = vmatmul.mubr.msk.f32.gmra.mrb[26].mxu1 %vm1257_vm3, %v2196_v27 }
 0x460   : > { %1657 = vmatprep.mubr.f32.mxu1 %v2906_v0 }
 0x463   : > { %2213 = vmatmul.mubr.msk.f32.gmra.mrb[28].mxu1 %vm1257_vm3, %v2197_v29 }
 0x464   : > { %1663 = vmatprep.mubr.f32.mxu1 %v2906_v0 }
 0x467   : > { %2214 = vmatmul.mubr.msk.f32.gmra.mrb[30].mxu1 %vm1257_vm3, %v2198_v31 }
 0x468   : > { %1669 = vmatprep.mubr.f32.mxu1 %v2906_v0 }
 0x46b   : > { %2215 = vmatmul.mubr.msk.f32.gmra.mrb[32].mxu1 %vm1257_vm3, %v2199_v32 }
 0x46c   : > { %1675 = vmatprep.mubr.f32.mxu1 %v2906_v0 }
 0x46f   : > { %2216 = vmatmul.mubr.msk.f32.gmra.mrb[2].mxu1 %vm1257_vm3, %v2200_v33 }
 0x470   : > { %1681 = vmatprep.mubr.f32.mxu1 %v2906_v0 }
 0x473   : > { %2217 = vmatmul.mubr.msk.f32.gmra.mrb[4].mxu1 %vm1257_vm3, %v2201_v34 }
 0x474   : > { %1687 = vmatprep.mubr.f32.mxu1 %v2906_v0 }
 0x477   : > { %2218 = vmatmul.mubr.msk.f32.gmra.mrb[6].mxu1 %vm1257_vm3, %v2202_v35 }
 0x478   : > { %1693 = vmatprep.mubr.f32.mxu1 %v2906_v0 }
 0x47b   : > { %2219 = vmatmul.mubr.msk.f32.gmra.mrb[8].mxu1 %vm1257_vm3, %v2203_v36 }
 0x47c   : > { %1699 = vmatprep.mubr.f32.mxu1 %v2906_v0 }
 0x47f   : > { %2220 = vmatmul.mubr.msk.f32.gmra.mrb[10].mxu1 %vm1257_vm3, %v2204_v37 }
 0x480   : > { %1705 = vmatprep.mubr.f32.mxu1 %v2906_v0 }
 0x483   : > { %v1217_v39 = vpop.f32.mrb[26].mxu0  ;;  %2221 = vmatmul.mubr.msk.f32.gmra.mrb[12].mxu1 %vm1257_vm3, %v2205_v38 }
 0x484   : > { %v1219_v41 = vpop.f32.mrb[27].mxu0  ;;  %1711 = vmatprep.mubr.f32.mxu1 %v2906_v0 }
 0x487   : > { %v1223_v46 = vpop.f32.mrb[28].mxu0  ;;  %2222 = vmatmul.mubr.msk.f32.gmra.mrb[14].mxu1 %vm1257_vm3, %v2206_v44 }
 0x488   : > { %v2544_v47 = vpack.c.bf16 %v1223_v46, %v1217_v39  ;;  %v1225_v48 = vpop.f32.mrb[29].mxu0  ;;  %1717 = vmatprep.mubr.f32.mxu1 %v2906_v0 }
 0x489   : > { %v2542_v50 = vpack.c.bf16 %v1225_v48, %v1219_v41 }
 0x48b   : > { %v1229_v51 = vpop.f32.mrb[30].mxu0  ;;  %2223 = vmatmul.mubr.msk.f32.gmra.mrb[16].mxu1 %vm1257_vm3, %v2207_v49  ;;  %2543 = vmatprep.subr.bf16.mxu1 %v2542_v50 }
 0x48c   : > { %v1231_v52 = vpop.f32.mrb[31].mxu0  ;;  %2545 = vmatpush1.bf16.msra.mxu1 %v2544_v47  ;;  %1723 = vmatprep.mubr.f32.mxu1 %v2906_v0 }
 0x48f   : > { %v1235_v54 = vpop.f32.mrb[32].mxu0  ;;  %2224 = vmatmul.mubr.msk.f32.gmra.mrb[18].mxu1 %vm1257_vm3, %v2208_v53 }
 0x490   : > { %v2548_v5 = vpack.c.bf16 %v1235_v54, %v1229_v51  ;;  %v1237_v55 = vpop.f32.mrb[33].mxu0  ;;  %1729 = vmatprep.mubr.f32.mxu1 %v2906_v0 }
 0x491   : > { %v2546_v18 = vpack.c.bf16 %v1237_v55, %v1231_v52 }
 0x493   : > { %2225 = vmatmul.mubr.msk.f32.gmra.mrb[20].mxu1 %vm1257_vm3, %v2209_v8  ;;  %2547 = vmatprep.subr.bf16.mxu1 %v2546_v18 }
 0x494   : > { %2549 = vmatpush1.bf16.msra.mxu1 %v2548_v5  ;;  %1897 = vmatprep.mubr.f32.mxu1 %v2906_v0 }
 0x497   : > { %2242 = vmatmul.mubr.msk.f32.vlgmr.msra.gmra.mrb[22].mxu1 %vm1257_vm3, %v2226_v16 }
 0x498   : > { %1903 = vmatprep.mubr.f32.mxu1 %v2906_v0 }
 0x49b   : > { %2243 = vmatmul.mubr.msk.f32.gmra.mrb[24].mxu1 %vm1257_vm3, %v2227_v30 }
 0x49c   : > { %1909 = vmatprep.mubr.f32.mxu1 %v2906_v0 }
 0x49f   : > { %2244 = vmatmul.mubr.msk.f32.gmra.mrb[26].mxu1 %vm1257_vm3, %v2228_v28 }
 0x4a0   : > { %1915 = vmatprep.mubr.f32.mxu1 %v2906_v0 }
 0x4a3   : > { %2245 = vmatmul.mubr.msk.f32.gmra.mrb[28].mxu1 %vm1257_vm3, %v2229_v56 }
 0x4a4   : > { %1921 = vmatprep.mubr.f32.mxu1 %v2906_v0 }
 0x4a7   : > { %2246 = vmatmul.mubr.msk.f32.gmra.mrb[30].mxu1 %vm1257_vm3, %v2230_v42 }
 0x4a8   : > { %1927 = vmatprep.mubr.f32.mxu1 %v2906_v0 }
 0x4ab   : > { %2247 = vmatmul.mubr.msk.f32.gmra.mrb[32].mxu1 %vm1257_vm3, %v2231_v40 }
 0x4ac   : > { %1933 = vmatprep.mubr.f32.mxu1 %v2906_v0 }
 0x4af   : > { %2248 = vmatmul.mubr.msk.f32.gmra.mrb[2].mxu1 %vm1257_vm3, %v2232_v57 }
 0x4b0   : > { %1939 = vmatprep.mubr.f32.mxu1 %v2906_v0 }
 0x4b3   : > { %2249 = vmatmul.mubr.msk.f32.gmra.mrb[4].mxu1 %vm1257_vm3, %v2233_v58 }
 0x4b4   : > { %1945 = vmatprep.mubr.f32.mxu1 %v2906_v0 }
 0x4b7   : > { %2250 = vmatmul.mubr.msk.f32.gmra.mrb[6].mxu1 %vm1257_vm3, %v2234_v59 }
 0x4b8   : > { %1951 = vmatprep.mubr.f32.mxu1 %v2906_v0 }
 0x4bb   : > { %2251 = vmatmul.mubr.msk.f32.gmra.mrb[8].mxu1 %vm1257_vm3, %v2235_v60 }
 0x4bc   : > { %1957 = vmatprep.mubr.f32.mxu1 %v2906_v0 }
 0x4bf   : > { %2252 = vmatmul.mubr.msk.f32.gmra.mrb[10].mxu1 %vm1257_vm3, %v2236_v61 }
 0x4c0   : > { %1963 = vmatprep.mubr.f32.mxu1 %v2906_v0 }
 0x4c3   : > { %2253 = vmatmul.mubr.msk.f32.gmra.mrb[12].mxu1 %vm1257_vm3, %v2237_v62 }
 0x4c4   : > { %1969 = vmatprep.mubr.f32.mxu1 %v2906_v0 }
 0x4c7   : > { %2254 = vmatmul.mubr.msk.f32.gmra.mrb[14].mxu1 %vm1257_vm3, %v2238_v63 }
 0x4c8   : > { %1975 = vmatprep.mubr.f32.mxu1 %v2906_v0 }
 0x4cb   : > { %2255 = vmatmul.mubr.msk.f32.gmra.mrb[16].mxu1 %vm1257_vm3, %v2239_v1 }
 0x4cc   : > { %1981 = vmatprep.mubr.f32.mxu1 %v2906_v0 }
 0x4cf   : > { %2256 = vmatmul.mubr.msk.f32.gmra.mrb[18].mxu1 %vm1257_vm3, %v2240_v2 }
 0x4d0   : > { %1987 = vmatprep.mubr.f32.mxu1 %v2906_v0 }
 0x4d3   : > { %2257 = vmatmul.mubr.msk.f32.gmra.mrb[20].mxu1 %vm1257_vm3, %v2241_v3 }
 0x4ea   : > { %v1372_v4 = vpop.f32.mrb[34].mxu0 }
 0x4eb   : > { %v1374_v6 = vpop.f32.mrb[35].mxu0  ;;  %v1478_v22 = vadd.f32 %v3628_v20, %v1372_v4 }
 0x4ec   : > { %v1479_v23 = vadd.f32 %v3631_v21, %v1374_v6 }
 0x4ee   : > { %v1378_v7 = vpop.f32.mrb[36].mxu0 }
 0x4ef   : > { %v1380_v9 = vpop.f32.mrb[37].mxu0  ;;  %v1480_v27 = vadd.f32 %v3628_v20, %v1378_v7 }
 0x4f0   : > { %v1481_v31 = vadd.f32 %v3631_v21, %v1380_v9 }
 0x4f2   : > { %v1384_v10 = vpop.f32.mrb[38].mxu0 }
 0x4f3   : > { %v1386_v11 = vpop.f32.mrb[39].mxu0  ;;  %v1482_v33 = vadd.f32 %v3628_v20, %v1384_v10 }
 0x4f4   : > { %v1483_v35 = vadd.f32 %v3631_v21, %v1386_v11 }
 0x4f6   : > { %v1390_v12 = vpop.f32.mrb[40].mxu0 }
 0x4f7   : > { %v1392_v13 = vpop.f32.mrb[41].mxu0  ;;  %v1484_v39 = vadd.f32 %v3628_v20, %v1390_v12 }
 0x4f8   : > { %v1485_v44 = vadd.f32 %v3631_v21, %v1392_v13 }
 0x4fa   : > { %v1396_v14 = vpop.f32.mrb[42].mxu0 }
 0x4fb   : > { %v1398_v15 = vpop.f32.mrb[43].mxu0  ;;  %v1486_v49 = vadd.f32 %v3628_v20, %v1396_v14 }
 0x4fc   : > { %v1487_v51 = vadd.f32 %v3631_v21, %v1398_v15 }
 0x4fe   : > { %v1402_v17 = vpop.f32.mrb[44].mxu0 }
 0x4ff   : > { %v1404_v0 = vpop.f32.mrb[45].mxu0  ;;  %v1488_v5 = vadd.f32 %v3628_v20, %v1402_v17 }
 0x500   : > { %v1489_v8 = vadd.f32 %v3631_v21, %v1404_v0 }
 0x56a   : > { %v1899_v24 = vpop.f32.mrb[22].mxu1 }
 0x56b   : > { %v2555_v25 = vadd.f32 %v1899_v24, %v1478_v22  ;;  %v1901_v26 = vpop.f32.mrb[23].mxu1 }
 0x56c   : > { %v2557_v29 = vadd.f32 %v1901_v26, %v1479_v23 }
 0x56d   : > { %2026 = vst [vmem:[%s3640_s24] sm:$0xff] %v2555_v25 }
 0x56e   : > { %2027 = vst [vmem:[%s3640_s24 + $0x8] sm:$0xff] %v2557_v29  ;;  %v1905_v43 = vpop.f32.mrb[24].mxu1 }
 0x56f   : > { %v2559_v45 = vadd.f32 %v1905_v43, %v1480_v27  ;;  %v1907_v32 = vpop.f32.mrb[25].mxu1 }
 0x570   : > { %v2561_v34 = vadd.f32 %v1907_v32, %v1481_v31 }
 0x571   : > { %2028 = vst [vmem:[%s3640_s24 + $0x10] sm:$0xff] %v2559_v45 }
 0x572   : > { %2029 = vst [vmem:[%s3640_s24 + $0x18] sm:$0xff] %v2561_v34  ;;  %v1911_v36 = vpop.f32.mrb[26].mxu1 }
 0x573   : > { %v2563_v37 = vadd.f32 %v1911_v36, %v1482_v33  ;;  %v1913_v38 = vpop.f32.mrb[27].mxu1 }
 0x574   : > { %v2565_v41 = vadd.f32 %v1913_v38, %v1483_v35 }
 0x575   : > { %2030 = vst [vmem:[%s3640_s24 + $0x20] sm:$0xff] %v2563_v37 }
 0x576   : > { %2031 = vst [vmem:[%s3640_s24 + $0x28] sm:$0xff] %v2565_v41  ;;  %v1917_v46 = vpop.f32.mrb[28].mxu1 }
 0x577   : > { %v2567_v47 = vadd.f32 %v1917_v46, %v1484_v39  ;;  %v1919_v48 = vpop.f32.mrb[29].mxu1 }
 0x578   : > { %v2569_v50 = vadd.f32 %v1919_v48, %v1485_v44 }
 0x579   : > { %2032 = vst [vmem:[%s3640_s24 + $0x30] sm:$0xff] %v2567_v47 }
 0x57a   : > { %2033 = vst [vmem:[%s3640_s24 + $0x38] sm:$0xff] %v2569_v50  ;;  %v1923_v52 = vpop.f32.mrb[30].mxu1 }
 0x57b   : > { %v2571_v53 = vadd.f32 %v1923_v52, %v1486_v49  ;;  %v1925_v54 = vpop.f32.mrb[31].mxu1 }
 0x57c   : > { %v2573_v55 = vadd.f32 %v1925_v54, %v1487_v51 }
 0x57d   : > { %2034 = vst [vmem:[%s3640_s24 + $0x40] sm:$0xff] %v2571_v53 }
 0x57e   : > { %2035 = vst [vmem:[%s3640_s24 + $0x48] sm:$0xff] %v2573_v55  ;;  %v1929_v18 = vpop.f32.mrb[32].mxu1 }
 0x57f   : > { %v2575_v16 = vadd.f32 %v1929_v18, %v1488_v5  ;;  %v1931_v30 = vpop.f32.mrb[33].mxu1 }
 0x580   : > { %v2577_v28 = vadd.f32 %v1931_v30, %v1489_v8 }
 0x581   : > { %2036 = vst [vmem:[%s3640_s24 + $0x50] sm:$0xff] %v2575_v16 }
 0x582   : > { %2037 = vst [vmem:[%s3640_s24 + $0x58] sm:$0xff] %v2577_v28  ;;  %v1935_v56 = vpop.f32.mrb[2].mxu1 }
 0x583   : > { %v2578_v42 = vadd.f32 %v1935_v56, %v3628_v20  ;;  %v1937_v40 = vpop.f32.mrb[3].mxu1 }
 0x584   : > { %v2579_v57 = vadd.f32 %v1937_v40, %v3631_v21 }
 0x585   : > { %2038 = vst [vmem:[%s3640_s24 + $0x60] sm:$0xff] %v2578_v42 }
 0x586   : > { %2039 = vst [vmem:[%s3640_s24 + $0x68] sm:$0xff] %v2579_v57  ;;  %v1941_v58 = vpop.f32.mrb[4].mxu1 }
 0x587   : > { %v2580_v59 = vadd.f32 %v1941_v58, %v3628_v20  ;;  %v1943_v60 = vpop.f32.mrb[5].mxu1 }
 0x588   : > { %v2581_v61 = vadd.f32 %v1943_v60, %v3631_v21 }
 0x589   : > { %2040 = vst [vmem:[%s3640_s24 + $0x70] sm:$0xff] %v2580_v59 }
 0x58a   : > { %2041 = vst [vmem:[%s3640_s24 + $0x78] sm:$0xff] %v2581_v61  ;;  %v1947_v62 = vpop.f32.mrb[6].mxu1 }
 0x58b   : > { %v2582_v63 = vadd.f32 %v1947_v62, %v3628_v20  ;;  %v1949_v1 = vpop.f32.mrb[7].mxu1 }
 0x58c   : > { %v2583_v2 = vadd.f32 %v1949_v1, %v3631_v21 }
 0x58d   : > { %2042 = vst [vmem:[%s3640_s24 + $0x80] sm:$0xff] %v2582_v63 }
 0x58e   : > { %2043 = vst [vmem:[%s3640_s24 + $0x88] sm:$0xff] %v2583_v2  ;;  %v1953_v3 = vpop.f32.mrb[8].mxu1 }
 0x58f   : > { %v2584_v4 = vadd.f32 %v1953_v3, %v3628_v20  ;;  %v1955_v6 = vpop.f32.mrb[9].mxu1 }
 0x590   : > { %v2585_v7 = vadd.f32 %v1955_v6, %v3631_v21 }
 0x591   : > { %2044 = vst [vmem:[%s3640_s24 + $0x90] sm:$0xff] %v2584_v4 }
 0x592   : > { %2045 = vst [vmem:[%s3640_s24 + $0x98] sm:$0xff] %v2585_v7  ;;  %v1959_v9 = vpop.f32.mrb[10].mxu1 }
 0x593   : > { %v2586_v10 = vadd.f32 %v1959_v9, %v3628_v20  ;;  %v1961_v11 = vpop.f32.mrb[11].mxu1 }
 0x594   : > { %v2587_v12 = vadd.f32 %v1961_v11, %v3631_v21 }
 0x595   : > { %2046 = vst [vmem:[%s3640_s24 + $0xa0] sm:$0xff] %v2586_v10 }
 0x596   : > { %2047 = vst [vmem:[%s3640_s24 + $0xa8] sm:$0xff] %v2587_v12  ;;  %v1965_v13 = vpop.f32.mrb[12].mxu1 }
 0x597   : > { %v2588_v14 = vadd.f32 %v1965_v13, %v3628_v20  ;;  %v1967_v15 = vpop.f32.mrb[13].mxu1 }
 0x598   : > { %v2589_v17 = vadd.f32 %v1967_v15, %v3631_v21 }
 0x599   : > { %2048 = vst [vmem:[%s3640_s24 + $0xb0] sm:$0xff] %v2588_v14 }
 0x59a   : > { %2049 = vst [vmem:[%s3640_s24 + $0xb8] sm:$0xff] %v2589_v17  ;;  %v1971_v0 = vpop.f32.mrb[14].mxu1 }
 0x59b   : > { %v2590_v19 = vadd.f32 %v1971_v0, %v3628_v20  ;;  %v1973_v22 = vpop.f32.mrb[15].mxu1 }
 0x59c   : > { %v2591_v23 = vadd.f32 %v1973_v22, %v3631_v21 }
 0x59d   : > { %2050 = vst [vmem:[%s3640_s24 + $0xc0] sm:$0xff] %v2590_v19 }
 0x59e   : > { %2051 = vst [vmem:[%s3640_s24 + $0xc8] sm:$0xff] %v2591_v23  ;;  %v1977_v24 = vpop.f32.mrb[16].mxu1 }
 0x59f   : > { %v2592_v25 = vadd.f32 %v1977_v24, %v3628_v20  ;;  %v1979_v26 = vpop.f32.mrb[17].mxu1 }
 0x5a0   : > { %v2593_v27 = vadd.f32 %v1979_v26, %v3631_v21 }
 0x5a1   : > { %2052 = vst [vmem:[%s3640_s24 + $0xd0] sm:$0xff] %v2592_v25 }
 0x5a2   : > { %2053 = vst [vmem:[%s3640_s24 + $0xd8] sm:$0xff] %v2593_v27  ;;  %v1983_v29 = vpop.f32.mrb[18].mxu1 }
 0x5a3   : > { %v2594_v31 = vadd.f32 %v1983_v29, %v3628_v20  ;;  %v1985_v43 = vpop.f32.mrb[19].mxu1 }
 0x5a4   : > { %v2595_v45 = vadd.f32 %v1985_v43, %v3631_v21 }
 0x5a5   : > { %2054 = vst [vmem:[%s3640_s24 + $0xe0] sm:$0xff] %v2594_v31 }
 0x5a6   : > { %2055 = vst [vmem:[%s3640_s24 + $0xe8] sm:$0xff] %v2595_v45  ;;  %v1989_v32 = vpop.f32.mrb[20].mxu1 }
 0x5a7   : > { %v2596_v33 = vadd.f32 %v1989_v32, %v3628_v20  ;;  %v1991_v34 = vpop.f32.mrb[21].mxu1 }
 0x5a8   : > { %v2597_v35 = vadd.f32 %v1991_v34, %v3631_v21 }
 0x5a9   : > { %2056 = vst [vmem:[%s3640_s24 + $0xf0] sm:$0xff] %v2596_v33 }
 0x5aa   : > { %2057 = vst [vmem:[%s3640_s24 + $0xf8] sm:$0xff] %v2597_v35 }
 0x5ab   : > { %2840 = shalt.err (!%p2837_p6)
}
 0x5ac   : > { %s2841_s13 = scalar_lea.hbm %s3704_s22, 4096  ;;  %s2845_s25 = scalar_lea.hbm %s3764_s10, 8192 }
 0x5ad   : > { %p2842_p9 = scmp.ne.s32.totalorder %s3704_s22, %s2841_s13  ;;  %p2846_p0 = scmp.lt.u32.totalorder %s3704_s22, %s3764_s10 }
 0x5ae   : > { %p2847_p5 = scmp.lt.u32.totalorder %s2845_s25, %s2841_s13  ;;  %p2849_p12 = scmp.lt.u32.totalorder %s2841_s13, %s3704_s22 }
 0x5af   : > { %p2843_p2 = pnand %p2842_p9, %p3790_p4 }
 0x5b0   : > { %p2848_p10 = por %p2847_p5, %p2846_p0 }
 0x5b1   : > { %p2844_p3 = pneg %p2843_p2 }
 0x5b2   : > { %p2850_p7 = por %p2849_p12, %p2848_p10 }
 0x5b4   : > { %p2851_p8 = pnand %p2850_p7, %p2844_p3 }
 0x5b6   : > { %2854 = shalt.err (!%p2851_p8)
}
 0x5b7   : > { %s2908_s19 = smov 256   ;;  %s2909_s24 = smov 16  }
 0x5b8   : > { %2662 = dma.vmem_to_hbm [thread:$0]  (%p3790_p4), %s3706_s26, 4096, %s3704_s22, %s3713_s17, %s2908_s19, %s2908_s19, %s2909_s24  }
 0x5b9 PF: > { %s3791_s21 = sld [smem:[#allocation14_spill]]  ;;  %s3792_s29 = sld [smem:[#allocation12_spill]] }
 0x5ba   : > { %s3793_s11 = sld [smem:[#allocation17_spill]] }
 0x5bf   : > { %p2684_p11 = scmp.ge.s32.totalorder %s3791_s21, 2  ;;  %s2088_s27 = sand.u32 1, %s3792_s29  }
 0x5c0   : > { %p3794_p13 = scmp.ne.s32.totalorder %s3793_s11, 0  ;;  %s2089_s30 = scalar_lea.sflag [#allocation4], %s2088_s27 }
 0x5c2   : > { %p2675_p1 = pnand %p2684_p11, %p3794_p13 }
 0x5c4   : > { %2880 = dma.done.wait (!%p2675_p1), %s2089_s30, 4096  }
 0x5c5   : > { %2882 = vsyncadd (!%p2675_p1), %s2089_s30, 4294963200  ;;  %s3795_s16 = sld [smem:[#allocation15_spill]]  ;;  %s3796_s18 = sld [smem:[#allocation13_spill]] }
 0x5c6   : > { %s3797_s15 = sld [smem:[#allocation16_spill]]  ;;  %s3798_s13 = smov %s2889_s14 }
 0x5cb   : > { %p22_p6 = scmp.ge.s32.totalorder %s3795_s16, 4   ;;  %s3799_s14 = smov %s3796_s18 }
 0x5cd   :  { %24 = sbr.rel (!%p22_p6) target bundleno = 5 (0x5), region = 108 }
 0x5d4   :  { %2094 = vsyncpa [#allocation3], 1 }
 0x5d5   :  { %2096 = vsyncpa [#allocation3 + $0x1], 1 }
 0x5d6   :  { %2097 = vsyncpa [#allocation6], 1 }
 0x5d7   :  { %2098 = vsyncpa [#allocation4], 1 }
 0x5d8   :  { %2100 = vsyncpa [#allocation4 + $0x1], 1 }

</bundles_post_ra>
